<compile_context>
chip_gen: v7x
topology: tpu7x:2x2x1
jax: 0.10.0
libtpu: 0.0.40
codegen_flags: <defaults>
</compile_context>

<pallas_src>
import math
from functools import partial

import jax
import jax.numpy as jnp
from jax import lax
from jax.experimental import pallas as pl
from jax.experimental.pallas import tpu as pltpu

LN_EPS = 1e-5
COMPUTE_DTYPE = jnp.bfloat16        # MXU operand dtype; accumulation is always f32

# ----- per-generation VMEM budget (v5e/v6e: 128 MiB physical, v7x: 64 MiB) -------
try:
    _VMEM_CAP = int(pltpu.get_tpu_info().vmem_capacity_bytes)
except Exception:
    _VMEM_CAP = 64 * 1024 * 1024    # conservative fallback (v7x-sized)
VMEM_LIMIT = min(100 * 1024 * 1024, max(32 * 1024 * 1024, int(0.8 * _VMEM_CAP)))
# Larger MLP row tiles only when there is VMEM headroom (v6e roofline feedback).
MLP_ROW_TARGET = 512 if VMEM_LIMIT >= 96 * 1024 * 1024 else 256
ROW_TARGET = 256


def _cp(*sems):
    return pltpu.CompilerParams(dimension_semantics=sems, vmem_limit_bytes=VMEM_LIMIT)


def _row_tile(m, target=ROW_TARGET):
    """Largest multiple-of-8 row tile <= target dividing m; prefer an even tile count."""
    assert m % 8 == 0, "row count (batch*seq) must be a multiple of 8; pad upstream"
    if m <= target:
        return m
    best = None
    for t in range(target - (target % 8), 7, -8):
        if m % t == 0:
            if (m // t) % 2 == 0:       # even number of tiles -> both v7x TCs busy
                return t
            if best is None:
                best = t
    return best if best is not None else 8


def _col_tile(n, target=512):
    """Largest multiple-of-128 column tile <= target dividing n (or n itself if small)."""
    if n <= target:
        return n
    for t in range(target - (target % 128), 127, -128):
        if n % t == 0:
            return t
    return n


def _heads_per_group(num_heads, d):
    """How many heads to process per attention grid step (aim for 128-lane blocks)."""
    if d >= 128:
        return 1
    hg = min(num_heads, max(1, 128 // d))
    while num_heads % hg != 0:
        hg -= 1
    return hg


# ----------------------- fused LayerNorm1 + QKV projection -----------------------

def _ln_qkv_kernel(x_ref, g_ref, b_ref, w_ref, bias_ref, o_ref):
    x = x_ref[...]                                   # (tm, H) f32 residual stream
    mu = jnp.mean(x, axis=-1, keepdims=True)
    xc = x - mu
    var = jnp.mean(xc * xc, axis=-1, keepdims=True)
    xn = (xc * lax.rsqrt(var + LN_EPS) * g_ref[...] + b_ref[...]).astype(COMPUTE_DTYPE)
    acc = jnp.dot(xn, w_ref[...], preferred_element_type=jnp.float32) + bias_ref[...]
    o_ref[...] = acc.astype(o_ref.dtype)


def ln_qkv_proj(x, gamma, beta, w_qkv, b_qkv, *, out_dtype=COMPUTE_DTYPE):
    """qkv = layernorm(x) @ w_qkv + b_qkv.  x:(M,H) f32 -> (M,3H) bf16."""
    M, H = x.shape
    N = w_qkv.shape[1]
    tm = _row_tile(M)
    tn = _col_tile(N)                                # keeps weight blocks v7x-VMEM-safe
    return pl.pallas_call(
        _ln_qkv_kernel,
        out_shape=jax.ShapeDtypeStruct((M, N), out_dtype),
        grid_spec=pltpu.PrefetchScalarGridSpec(
            num_scalar_prefetch=0,
            grid=(M // tm, N // tn),
            in_specs=[
                pl.BlockSpec((tm, H), lambda i, j: (i, 0)),
                pl.BlockSpec((1, H), lambda i, j: (0, 0)),
                pl.BlockSpec((1, H), lambda i, j: (0, 0)),
                pl.BlockSpec((H, tn), lambda i, j: (0, j)),
                pl.BlockSpec((1, tn), lambda i, j: (0, j)),
            ],
            out_specs=pl.BlockSpec((tm, tn), lambda i, j: (i, j)),
        ),
        compiler_params=_cp("parallel", "parallel"),
    )(x, gamma.reshape(1, H), beta.reshape(1, H), w_qkv, b_qkv.reshape(1, N))


# ------------------------ attention core (head-grouped) ---------------------------

def _attention_kernel(q_ref, k_ref, v_ref, o_ref, *, scale, d, hg):
    # Blocks are (S, hg*d) lane-dense slices of the fused QKV buffer.
    qg = q_ref[...]
    kg = k_ref[...]
    vg = v_ref[...]
    for h in range(hg):                               # static unroll over grouped heads
        lo = h * d
        q = qg[:, lo:lo + d]
        k = kg[:, lo:lo + d]
        v = vg[:, lo:lo + d]
        # contract last axes directly (no k.T -> no XLU transpose / VMEM copy)
        s = lax.dot_general(q, k, (((1,), (1,)), ((), ())),
                            preferred_element_type=jnp.float32) * scale
        m = jnp.max(s, axis=-1, keepdims=True)        # stable softmax in f32
        e = jnp.exp(s - m)
        p = e * pl.reciprocal(jnp.sum(e, axis=-1, keepdims=True), approx=True)
        o = jnp.dot(p.astype(v.dtype), v, preferred_element_type=jnp.float32)
        o_ref[:, lo:lo + d] = o.astype(o_ref.dtype)


def attention_core(qkv, *, B, S, H, num_heads):
    """qkv:(M,3H) bf16 (q|k|v concat) -> ctx:(M,H) bf16, per-head softmax attention."""
    # TODO(synk): add flash-style kv tiling (online softmax) for long sequences; the
    # full (S,S) score matrix per head is fine for ViT-scale S but not S >= 4k.
    M, N3 = qkv.shape
    assert M == B * S and N3 == 3 * H
    assert S % 8 == 0, "seq_len must be a multiple of 8; pad upstream"
    d = H // num_heads
    hg = _heads_per_group(num_heads, d)
    G = hg * d
    assert G % 128 == 0, (
        "head group width must be a multiple of 128 lanes; "
        "TODO(synk): pad size_per_head / handle odd head counts")
    n_hg = H // G
    kern = partial(_attention_kernel, scale=1.0 / math.sqrt(d), d=d, hg=hg)
    return pl.pallas_call(
        kern,
        out_shape=jax.ShapeDtypeStruct((M, H), qkv.dtype),
        grid_spec=pltpu.PrefetchScalarGridSpec(
            num_scalar_prefetch=0,
            grid=(B, n_hg),
            in_specs=[
                pl.BlockSpec((S, G), lambda b, g: (b, g)),              # q columns
                pl.BlockSpec((S, G), lambda b, g: (b, n_hg + g)),       # k columns
                pl.BlockSpec((S, G), lambda b, g: (b, 2 * n_hg + g)),   # v columns
            ],
            out_specs=pl.BlockSpec((S, G), lambda b, g: (b, g)),        # ctx columns
        ),
        compiler_params=_cp("parallel", "parallel"),
    )(qkv, qkv, qkv)


# --------------- attention output projection + residual + LayerNorm2 --------------

def _attn_out_res_ln_kernel(ctx_ref, w_ref, x_ref, g_ref, b_ref, xo_ref, ln_ref):
    acc = jnp.dot(ctx_ref[...], w_ref[...], preferred_element_type=jnp.float32)
    x_new = x_ref[...] + acc                          # f32 residual stream
    xo_ref[...] = x_new
    mu = jnp.mean(x_new, axis=-1, keepdims=True)      # fused pre-MLP LayerNorm
    xc = x_new - mu
    var = jnp.mean(xc * xc, axis=-1, keepdims=True)
    ln_ref[...] = (xc * lax.rsqrt(var + LN_EPS) * g_ref[...] + b_ref[...]).astype(ln_ref.dtype)


def attn_out_residual_ln(ctx, w_o, x_res, gamma, beta):
    """x_new = x_res + ctx @ w_o ; also returns layernorm(x_new) in bf16."""
    M, H = ctx.shape
    tm = _row_tile(M)
    return pl.pallas_call(
        _attn_out_res_ln_kernel,
        out_shape=(jax.ShapeDtypeStruct((M, H), jnp.float32),
                   jax.ShapeDtypeStruct((M, H), COMPUTE_DTYPE)),
        grid_spec=pltpu.PrefetchScalarGridSpec(
            num_scalar_prefetch=0,
            grid=(M // tm,),
            in_specs=[
                pl.BlockSpec((tm, H), lambda i: (i, 0)),
                pl.BlockSpec((H, H), lambda i: (0, 0)),
                pl.BlockSpec((tm, H), lambda i: (i, 0)),
                pl.BlockSpec((1, H), lambda i: (0, 0)),
                pl.BlockSpec((1, H), lambda i: (0, 0)),
            ],
            out_specs=[pl.BlockSpec((tm, H), lambda i: (i, 0)),
                       pl.BlockSpec((tm, H), lambda i: (i, 0))],
        ),
        compiler_params=_cp("parallel"),
    )(ctx, w_o, x_res, gamma.reshape(1, H), beta.reshape(1, H))


# -------------------------- MLP (+ residual) kernels -------------------------------

def _mlp_kernel_resident(x_ref, w1_ref, b1_ref, w2_ref, res_ref, o_ref):
    # Single grid step over I: W1/W2 stay VMEM-resident, no accumulator needed.
    h = jnp.dot(x_ref[...], w1_ref[...], preferred_element_type=jnp.float32) + b1_ref[...]
    act = (h * jax.nn.sigmoid(1.702 * h)).astype(COMPUTE_DTYPE)   # my_gelu in f32
    o_ref[...] = res_ref[...] + jnp.dot(act, w2_ref[...], preferred_element_type=jnp.float32)


def _mlp_kernel_tiled(x_ref, w1_ref, b1_ref, w2_ref, res_ref, o_ref, acc_ref):
    ki = pl.program_id(1)

    @pl.when(ki == 0)
    def _():
        acc_ref[...] = jnp.zeros_like(acc_ref)

    h = jnp.dot(x_ref[...], w1_ref[...], preferred_element_type=jnp.float32) + b1_ref[...]
    act = (h * jax.nn.sigmoid(1.702 * h)).astype(COMPUTE_DTYPE)
    acc_ref[...] += jnp.dot(act, w2_ref[...], preferred_element_type=jnp.float32)

    @pl.when(ki == pl.num_programs(1) - 1)
    def _():
        o_ref[...] = res_ref[...] + acc_ref[...]


def mlp_block_residual(x, w1, b1, w2, residual):
    """residual + my_gelu(x @ w1 + b1) @ w2.  I axis tiled only when weights don't fit."""
    M, H = x.shape
    I = w1.shape[1]
    tm = _row_tile(M, target=MLP_ROW_TARGET)
    # double-buffered bf16 W1+W2 footprint vs a third of the scoped VMEM budget
    resident_bytes = 2 * (2 * H * I) * jnp.dtype(COMPUTE_DTYPE).itemsize
    if resident_bytes <= VMEM_LIMIT // 3:
        return pl.pallas_call(
            _mlp_kernel_resident,
            out_shape=jax.ShapeDtypeStruct((M, H), residual.dtype),
            grid_spec=pltpu.PrefetchScalarGridSpec(
                num_scalar_prefetch=0,
                grid=(M // tm,),
                in_specs=[
                    pl.BlockSpec((tm, H), lambda i: (i, 0)),
                    pl.BlockSpec((H, I), lambda i: (0, 0)),     # resident W1
                    pl.BlockSpec((1, I), lambda i: (0, 0)),
                    pl.BlockSpec((I, H), lambda i: (0, 0)),     # resident W2
                    pl.BlockSpec((tm, H), lambda i: (i, 0)),
                ],
                out_specs=pl.BlockSpec((tm, H), lambda i: (i, 0)),
            ),
            compiler_params=_cp("parallel"),
        )(x, w1, b1.reshape(1, I), w2, residual)

    ti = _col_tile(I, target=512)                    # real divisor of I, v7x-VMEM-safe
    return pl.pallas_call(
        _mlp_kernel_tiled,
        out_shape=jax.ShapeDtypeStruct((M, H), residual.dtype),
        grid_spec=pltpu.PrefetchScalarGridSpec(
            num_scalar_prefetch=0,
            grid=(M // tm, I // ti),
            in_specs=[
                pl.BlockSpec((tm, H), lambda i, ki: (i, 0)),
                pl.BlockSpec((H, ti), lambda i, ki: (0, ki)),
                pl.BlockSpec((1, ti), lambda i, ki: (0, ki)),
                pl.BlockSpec((ti, H), lambda i, ki: (ki, 0)),
                pl.BlockSpec((tm, H), lambda i, ki: (i, 0)),
            ],
            out_specs=pl.BlockSpec((tm, H), lambda i, ki: (i, 0)),
            scratch_shapes=[pltpu.VMEM((tm, H), jnp.float32)],
        ),
        compiler_params=_cp("parallel", "arbitrary"),
    )(x, w1, b1.reshape(1, I), w2, residual)


# --------------------------------- full layer --------------------------------------

@partial(jax.jit, static_argnames=("num_heads",))
def transformer_layer(x, kp, *, num_heads, sinusoids=None, attention_bias=None):
    """Pre-LN transformer layer forward, matching TransformerLayer.forward."""
    # TODO(synk): rotary embeddings (sinusoids) and the multiplicative attention_bias
    # are not implemented; this covers the default sinusoids=None / attention_bias=None path.
    assert sinusoids is None and attention_bias is None
    B, S, H = x.shape
    M = B * S

    x2d = x.reshape(M, H).astype(jnp.float32)                      # residual stream, f32

    # fused pre-attn LayerNorm + QKV projection  -> (M, 3H) bf16
    qkv = ln_qkv_proj(x2d, kp["ln1_g"], kp["ln1_b"], kp["w_qkv"], kp["b_qkv"])

    # per-head attention, reading q/k/v straight from the fused buffer -> (M, H) bf16
    ctx = attention_core(qkv, B=B, S=S, H=H, num_heads=num_heads)

    # attention output projection + first residual, with pre-MLP LayerNorm fused
    x2d, x_ln2 = attn_out_residual_ln(ctx, kp["w_o"], x2d, kp["ln2_g"], kp["ln2_b"])

    # MLP (+ second residual fused into the kernel)
    out2d = mlp_block_residual(x_ln2, kp["w1"], kp["b1"], kp["w2"], x2d)

    return out2d.reshape(B, S, H)


# --------------------------------- parameters --------------------------------------

def init_params(key, hidden_size, *, expansion_mult=4, dtype=jnp.float32):
    """f32 parameters mimicking nn.Linear / nn.LayerNorm defaults, stored (in, out)."""
    H = hidden_size
    I = H * expansion_mult
    ks = jax.random.split(key, 10)

    def uni(k, shape, fan_in):
        b = 1.0 / math.sqrt(fan_in)
        return jax.random.uniform(k, shape, dtype, -b, b)

    return dict(
        ln1_g=jnp.ones((H,), dtype), ln1_b=jnp.zeros((H,), dtype),
        ln2_g=jnp.ones((H,), dtype), ln2_b=jnp.zeros((H,), dtype),
        wq=uni(ks[0], (H, H), H), bq=uni(ks[1], (H,), H),
        wk=uni(ks[2], (H, H), H), bk=uni(ks[3], (H,), H),
        wv=uni(ks[4], (H, H), H), bv=uni(ks[5], (H,), H),
        wo=uni(ks[6], (H, H), H),
        w1=uni(ks[7], (H, I), H), b1=uni(ks[8], (I,), H),
        w2=uni(ks[9], (I, H), I),
    )


def pack_kernel_params(p):
    """bf16 matmul weights (f32 accumulation in-kernel); biases & LayerNorm params in f32."""
    return dict(
        ln1_g=p["ln1_g"].astype(jnp.float32), ln1_b=p["ln1_b"].astype(jnp.float32),
        ln2_g=p["ln2_g"].astype(jnp.float32), ln2_b=p["ln2_b"].astype(jnp.float32),
        w_qkv=jnp.concatenate([p["wq"], p["wk"], p["wv"]], axis=1).astype(COMPUTE_DTYPE),
        b_qkv=jnp.concatenate([p["bq"], p["bk"], p["bv"]], axis=0).astype(jnp.float32),
        w_o=p["wo"].astype(COMPUTE_DTYPE),
        w1=p["w1"].astype(COMPUTE_DTYPE),
        b1=p["b1"].astype(jnp.float32),
        w2=p["w2"].astype(COMPUTE_DTYPE),
    )


# -------------------------------- f32 reference ------------------------------------

def reference_transformer_layer(x, p, num_heads):
    def ln(t, g, b):
        mu = t.mean(-1, keepdims=True)
        tc = t - mu
        var = (tc * tc).mean(-1, keepdims=True)
        return tc / jnp.sqrt(var + LN_EPS) * g + b

    B, S, H = x.shape
    d = H // num_heads
    x = x.astype(jnp.float32)

    x_ln = ln(x, p["ln1_g"], p["ln1_b"])
    q = (x_ln @ p["wq"] + p["bq"]).reshape(B, S, num_heads, d)
    k = (x_ln @ p["wk"] + p["bk"]).reshape(B, S, num_heads, d)
    v = (x_ln @ p["wv"] + p["bv"]).reshape(B, S, num_heads, d)
    scores = jnp.einsum("bqhd,bkhd->bhqk", q / math.sqrt(d), k)
    probs = jax.nn.softmax(scores, axis=-1)
    ctx = jnp.einsum("bhqk,bkhd->bqhd", probs, v).reshape(B, S, H)
    x = x + ctx @ p["wo"]

    x_ln2 = ln(x, p["ln2_g"], p["ln2_b"])
    h = x_ln2 @ p["w1"] + p["b1"]
    h = h * jax.nn.sigmoid(1.702 * h)
    x = x + h @ p["w2"]
    return x


if __name__ == "__main__":
    hidden_size = 128          # multiple of 128 -> lane-dense tiles everywhere
    size_per_head = 64
    expansion_mult = 4
    batch, seq = 2, 8          # M = 16 rows (multiple of 8)
    num_heads = hidden_size // size_per_head

    key = jax.random.PRNGKey(0)
    kx, kp = jax.random.split(key)
    x = jax.random.normal(kx, (batch, seq, hidden_size), jnp.float32)

    params_f32 = init_params(kp, hidden_size, expansion_mult=expansion_mult)
    kparams = pack_kernel_params(params_f32)

    out = transformer_layer(x, kparams, num_heads=num_heads)
    out = jax.block_until_ready(out)

    ref = reference_transformer_layer(x, params_f32, num_heads)
    assert out.shape == ref.shape
    # bf16 MXU operands with f32 accumulation -> loosened tolerance vs f32 reference
    max_err = jnp.max(jnp.abs(out - ref))
    assert jnp.allclose(out, ref, atol=5e-2, rtol=5e-2), f"mismatch vs reference, max abs err={max_err}"

    print("KERNEL_OK")
</pallas_src>

<mosaic_0001>
module attributes {stable_mosaic.version = 11 : i64} {
  func.func @_attn_out_res_ln_kernel(%arg0: i32, %arg1: memref<16x128xbf16, #tpu.memory_space<vmem>>, %arg2: memref<128x128xbf16, #tpu.memory_space<vmem>>, %arg3: memref<16x128xf32, #tpu.memory_space<vmem>>, %arg4: memref<1x128xf32, #tpu.memory_space<vmem>>, %arg5: memref<1x128xf32, #tpu.memory_space<vmem>>, %arg6: memref<16x128xf32, #tpu.memory_space<vmem>>, %arg7: memref<16x128xbf16, #tpu.memory_space<vmem>>) attributes {dimension_semantics = [#tpu.dimension_semantics<parallel>], iteration_bounds = array<i64: 1>, scalar_prefetch = 0 : i64, scratch_operands = 0 : i64, tpu.core_type = #tpu.core_type<tc>, window_params = [{transform_indices = @transform_0, window_bounds = array<i64: 16, 128>}, {pipeline_mode = #tpu.pipeline_mode<synchronous>, transform_indices = @transform_1, window_bounds = array<i64: 128, 128>}, {transform_indices = @transform_2, window_bounds = array<i64: 16, 128>}, {pipeline_mode = #tpu.pipeline_mode<synchronous>, transform_indices = @transform_3, window_bounds = array<i64: 1, 128>}, {pipeline_mode = #tpu.pipeline_mode<synchronous>, transform_indices = @transform_4, window_bounds = array<i64: 1, 128>}, {transform_indices = @transform_5, window_bounds = array<i64: 16, 128>}, {transform_indices = @transform_6, window_bounds = array<i64: 16, 128>}]} {
    %c0 = arith.constant 0 : index
    %c0_0 = arith.constant 0 : index
    %0 = vector.load %arg1[%c0, %c0_0] : memref<16x128xbf16, #tpu.memory_space<vmem>>, vector<16x128xbf16>
    %c0_1 = arith.constant 0 : index
    %c0_2 = arith.constant 0 : index
    %1 = vector.load %arg2[%c0_1, %c0_2] : memref<128x128xbf16, #tpu.memory_space<vmem>>, vector<128x128xbf16>
    %cst = arith.constant dense<0.000000e+00> : vector<16x128xf32>
    %2 = tpu.matmul %0, %1, %cst {dimension_numbers = #tpu.dot_dimension_numbers<[1], [0], [0], [1], [0, 0, 1, 1], [], []>} : vector<16x128xbf16>, vector<128x128xbf16>, vector<16x128xf32> -> vector<16x128xf32>
    %c0_3 = arith.constant 0 : index
    %c0_4 = arith.constant 0 : index
    %3 = vector.load %arg3[%c0_3, %c0_4] : memref<16x128xf32, #tpu.memory_space<vmem>>, vector<16x128xf32>
    %4 = arith.addf %3, %2 : vector<16x128xf32>
    %c0_5 = arith.constant 0 : index
    %c0_6 = arith.constant 0 : index
    %5 = vector.load %arg6[%c0_5, %c0_6] : memref<16x128xf32, #tpu.memory_space<vmem>>, vector<16x128xf32>
    tpu.vector_store %arg6[%c0_5, %c0_6], %4 {strides = array<i32>} : memref<16x128xf32, #tpu.memory_space<vmem>>, vector<16x128xf32>,
    %cst_7 = arith.constant dense<0.000000e+00> : vector<16xf32>
    %6 = vector.multi_reduction <add>, %4, %cst_7 [1] : vector<16x128xf32> to vector<16xf32>
    %7 = vector.shape_cast %6 : vector<16xf32> to vector<16x1xf32>
    %cst_8 = arith.constant 1.280000e+02 : f32
    %8 = vector.broadcast %cst_8 : f32 to vector<16x1xf32>
    %9 = arith.divf %7, %8 : vector<16x1xf32>
    %10 = vector.broadcast %9 : vector<16x1xf32> to vector<16x128xf32>
    %11 = arith.subf %4, %10 : vector<16x128xf32>
    %12 = arith.mulf %11, %11 : vector<16x128xf32>
    %cst_9 = arith.constant dense<0.000000e+00> : vector<16xf32>
    %13 = vector.multi_reduction <add>, %12, %cst_9 [1] : vector<16x128xf32> to vector<16xf32>
    %14 = vector.shape_cast %13 : vector<16xf32> to vector<16x1xf32>
    %cst_10 = arith.constant 1.280000e+02 : f32
    %15 = vector.broadcast %cst_10 : f32 to vector<16x1xf32>
    %16 = arith.divf %14, %15 : vector<16x1xf32>
    %cst_11 = arith.constant 9.99999974E-6 : f32
    %17 = vector.broadcast %cst_11 : f32 to vector<16x1xf32>
    %18 = arith.addf %16, %17 : vector<16x1xf32>
    %19 = math.rsqrt %18 : vector<16x1xf32>
    %20 = vector.broadcast %19 : vector<16x1xf32> to vector<16x128xf32>
    %21 = arith.mulf %11, %20 : vector<16x128xf32>
    %c0_12 = arith.constant 0 : index
    %c0_13 = arith.constant 0 : index
    %22 = vector.load %arg4[%c0_12, %c0_13] : memref<1x128xf32, #tpu.memory_space<vmem>>, vector<1x128xf32>
    %23 = vector.broadcast %22 : vector<1x128xf32> to vector<16x128xf32>
    %24 = arith.mulf %21, %23 : vector<16x128xf32>
    %c0_14 = arith.constant 0 : index
    %c0_15 = arith.constant 0 : index
    %25 = vector.load %arg5[%c0_14, %c0_15] : memref<1x128xf32, #tpu.memory_space<vmem>>, vector<1x128xf32>
    %26 = vector.broadcast %25 : vector<1x128xf32> to vector<16x128xf32>
    %27 = arith.addf %24, %26 : vector<16x128xf32>
    %28 = arith.truncf %27 : vector<16x128xf32> to vector<16x128xbf16>
    %c0_16 = arith.constant 0 : index
    %c0_17 = arith.constant 0 : index
    %29 = vector.load %arg7[%c0_16, %c0_17] : memref<16x128xbf16, #tpu.memory_space<vmem>>, vector<16x128xbf16>
    tpu.vector_store %arg7[%c0_16, %c0_17], %28 {strides = array<i32>} : memref<16x128xbf16, #tpu.memory_space<vmem>>, vector<16x128xbf16>,
    return
  }
  func.func @transform_0(%arg0: i32) -> (i32, i32) {
    %c0_i32 = arith.constant 0 : i32
    %c0_i32_0 = arith.constant 0 : i32
    return %arg0, %c0_i32 : i32, i32
  }
  func.func @transform_1(%arg0: i32) -> (i32, i32) {
    %c0_i32 = arith.constant 0 : i32
    %c0_i32_0 = arith.constant 0 : i32
    %c0_i32_1 = arith.constant 0 : i32
    return %c0_i32, %c0_i32_0 : i32, i32
  }
  func.func @transform_2(%arg0: i32) -> (i32, i32) {
    %c0_i32 = arith.constant 0 : i32
    %c0_i32_0 = arith.constant 0 : i32
    return %arg0, %c0_i32 : i32, i32
  }
  func.func @transform_3(%arg0: i32) -> (i32, i32) {
    %c0_i32 = arith.constant 0 : i32
    %c0_i32_0 = arith.constant 0 : i32
    %c0_i32_1 = arith.constant 0 : i32
    return %c0_i32, %c0_i32_0 : i32, i32
  }
  func.func @transform_4(%arg0: i32) -> (i32, i32) {
    %c0_i32 = arith.constant 0 : i32
    %c0_i32_0 = arith.constant 0 : i32
    %c0_i32_1 = arith.constant 0 : i32
    return %c0_i32, %c0_i32_0 : i32, i32
  }
  func.func @transform_5(%arg0: i32) -> (i32, i32) {
    %c0_i32 = arith.constant 0 : i32
    %c0_i32_0 = arith.constant 0 : i32
    return %arg0, %c0_i32 : i32, i32
  }
  func.func @transform_6(%arg0: i32) -> (i32, i32) {
    %c0_i32 = arith.constant 0 : i32
    %c0_i32_0 = arith.constant 0 : i32
    return %arg0, %c0_i32 : i32, i32
  }
}

module attributes {stable_mosaic.version = 11 : i64} {
  func.func @_attention_kernel(%arg0: i32, %arg1: i32, %arg2: memref<8x128xbf16, #tpu.memory_space<vmem>>, %arg3: memref<8x128xbf16, #tpu.memory_space<vmem>>, %arg4: memref<8x128xbf16, #tpu.memory_space<vmem>>, %arg5: memref<8x128xbf16, #tpu.memory_space<vmem>>) attributes {dimension_semantics = [#tpu.dimension_semantics<parallel>, #tpu.dimension_semantics<parallel>], iteration_bounds = array<i64: 2, 1>, scalar_prefetch = 0 : i64, scratch_operands = 0 : i64, tpu.core_type = #tpu.core_type<tc>, window_params = [{transform_indices = @transform_0, window_bounds = array<i64: 8, 128>}, {transform_indices = @transform_1, window_bounds = array<i64: 8, 128>}, {transform_indices = @transform_2, window_bounds = array<i64: 8, 128>}, {transform_indices = @transform_3, window_bounds = array<i64: 8, 128>}]} {
    %c0 = arith.constant 0 : index
    %c0_0 = arith.constant 0 : index
    %0 = vector.load %arg2[%c0, %c0_0] : memref<8x128xbf16, #tpu.memory_space<vmem>>, vector<8x128xbf16>
    %c0_1 = arith.constant 0 : index
    %c0_2 = arith.constant 0 : index
    %1 = vector.load %arg3[%c0_1, %c0_2] : memref<8x128xbf16, #tpu.memory_space<vmem>>, vector<8x128xbf16>
    %c0_3 = arith.constant 0 : index
    %c0_4 = arith.constant 0 : index
    %2 = vector.load %arg4[%c0_3, %c0_4] : memref<8x128xbf16, #tpu.memory_space<vmem>>, vector<8x128xbf16>
    %3 = vector.extract_strided_slice %0 {offsets = [0, 0], sizes = [8, 64], strides = [1, 1]} : vector<8x128xbf16> to vector<8x64xbf16>
    %4 = vector.extract_strided_slice %1 {offsets = [0, 0], sizes = [8, 64], strides = [1, 1]} : vector<8x128xbf16> to vector<8x64xbf16>
    %5 = vector.extract_strided_slice %2 {offsets = [0, 0], sizes = [8, 64], strides = [1, 1]} : vector<8x128xbf16> to vector<8x64xbf16>
    %cst = arith.constant dense<0.000000e+00> : vector<8x8xf32>
    %6 = tpu.matmul %3, %4, %cst {dimension_numbers = #tpu.dot_dimension_numbers<[1], [1], [0], [0], [0, 0, 1, 0], [], []>} : vector<8x64xbf16>, vector<8x64xbf16>, vector<8x8xf32> -> vector<8x8xf32>
    %cst_5 = arith.constant 1.250000e-01 : f32
    %7 = vector.broadcast %cst_5 : f32 to vector<8x8xf32>
    %8 = arith.mulf %6, %7 : vector<8x8xf32>
    %cst_6 = arith.constant dense<0xFF800000> : vector<8xf32>
    %9 = vector.multi_reduction <maximumf>, %8, %cst_6 [1] : vector<8x8xf32> to vector<8xf32>
    %10 = vector.shape_cast %9 : vector<8xf32> to vector<8x1xf32>
    %11 = vector.broadcast %10 : vector<8x1xf32> to vector<8x8xf32>
    %12 = arith.subf %8, %11 : vector<8x8xf32>
    %13 = math.exp %12 : vector<8x8xf32>
    %cst_7 = arith.constant dense<0.000000e+00> : vector<8xf32>
    %14 = vector.multi_reduction <add>, %13, %cst_7 [1] : vector<8x8xf32> to vector<8xf32>
    %15 = vector.shape_cast %14 : vector<8xf32> to vector<8x1xf32>
    %16 = tpu.reciprocal %15 {approx = true} : vector<8x1xf32> -> vector<8x1xf32>
    %17 = vector.broadcast %16 : vector<8x1xf32> to vector<8x8xf32>
    %18 = arith.mulf %13, %17 : vector<8x8xf32>
    %19 = arith.truncf %18 : vector<8x8xf32> to vector<8x8xbf16>
    %cst_8 = arith.constant dense<0.000000e+00> : vector<8x64xf32>
    %20 = tpu.matmul %19, %5, %cst_8 {dimension_numbers = #tpu.dot_dimension_numbers<[1], [0], [0], [1], [0, 0, 1, 1], [], []>} : vector<8x8xbf16>, vector<8x64xbf16>, vector<8x64xf32> -> vector<8x64xf32>
    %21 = arith.truncf %20 : vector<8x64xf32> to vector<8x64xbf16>
    %c0_9 = arith.constant 0 : index
    %c0_10 = arith.constant 0 : index
    %22 = vector.load %arg5[%c0_9, %c0_10] : memref<8x128xbf16, #tpu.memory_space<vmem>>, vector<8x64xbf16>
    tpu.vector_store %arg5[%c0_9, %c0_10], %21 {strides = array<i32>} : memref<8x128xbf16, #tpu.memory_space<vmem>>, vector<8x64xbf16>,
    %23 = vector.extract_strided_slice %0 {offsets = [0, 64], sizes = [8, 64], strides = [1, 1]} : vector<8x128xbf16> to vector<8x64xbf16>
    %24 = vector.extract_strided_slice %1 {offsets = [0, 64], sizes = [8, 64], strides = [1, 1]} : vector<8x128xbf16> to vector<8x64xbf16>
    %25 = vector.extract_strided_slice %2 {offsets = [0, 64], sizes = [8, 64], strides = [1, 1]} : vector<8x128xbf16> to vector<8x64xbf16>
    %cst_11 = arith.constant dense<0.000000e+00> : vector<8x8xf32>
    %26 = tpu.matmul %23, %24, %cst_11 {dimension_numbers = #tpu.dot_dimension_numbers<[1], [1], [0], [0], [0, 0, 1, 0], [], []>} : vector<8x64xbf16>, vector<8x64xbf16>, vector<8x8xf32> -> vector<8x8xf32>
    %cst_12 = arith.constant 1.250000e-01 : f32
    %27 = vector.broadcast %cst_12 : f32 to vector<8x8xf32>
    %28 = arith.mulf %26, %27 : vector<8x8xf32>
    %cst_13 = arith.constant dense<0xFF800000> : vector<8xf32>
    %29 = vector.multi_reduction <maximumf>, %28, %cst_13 [1] : vector<8x8xf32> to vector<8xf32>
    %30 = vector.shape_cast %29 : vector<8xf32> to vector<8x1xf32>
    %31 = vector.broadcast %30 : vector<8x1xf32> to vector<8x8xf32>
    %32 = arith.subf %28, %31 : vector<8x8xf32>
    %33 = math.exp %32 : vector<8x8xf32>
    %cst_14 = arith.constant dense<0.000000e+00> : vector<8xf32>
    %34 = vector.multi_reduction <add>, %33, %cst_14 [1] : vector<8x8xf32> to vector<8xf32>
    %35 = vector.shape_cast %34 : vector<8xf32> to vector<8x1xf32>
    %36 = tpu.reciprocal %35 {approx = true} : vector<8x1xf32> -> vector<8x1xf32>
    %37 = vector.broadcast %36 : vector<8x1xf32> to vector<8x8xf32>
    %38 = arith.mulf %33, %37 : vector<8x8xf32>
    %39 = arith.truncf %38 : vector<8x8xf32> to vector<8x8xbf16>
    %cst_15 = arith.constant dense<0.000000e+00> : vector<8x64xf32>
    %40 = tpu.matmul %39, %25, %cst_15 {dimension_numbers = #tpu.dot_dimension_numbers<[1], [0], [0], [1], [0, 0, 1, 1], [], []>} : vector<8x8xbf16>, vector<8x64xbf16>, vector<8x64xf32> -> vector<8x64xf32>
    %41 = arith.truncf %40 : vector<8x64xf32> to vector<8x64xbf16>
    %c0_16 = arith.constant 0 : index
    %c64 = arith.constant 64 : index
    %42 = vector.load %arg5[%c0_16, %c64] : memref<8x128xbf16, #tpu.memory_space<vmem>>, vector<8x64xbf16>
    tpu.vector_store %arg5[%c0_16, %c64], %41 {strides = array<i32>} : memref<8x128xbf16, #tpu.memory_space<vmem>>, vector<8x64xbf16>,
    return
  }
  func.func @transform_0(%arg0: i32, %arg1: i32) -> (i32, i32) {
    %c0_i32 = arith.constant 0 : i32
    return %arg0, %arg1 : i32, i32
  }
  func.func @transform_1(%arg0: i32, %arg1: i32) -> (i32, i32) {
    %c1_i32 = arith.constant 1 : i32
    %0 = arith.addi %c1_i32, %arg1 : i32
    %c0_i32 = arith.constant 0 : i32
    return %arg0, %0 : i32, i32
  }
  func.func @transform_2(%arg0: i32, %arg1: i32) -> (i32, i32) {
    %c2_i32 = arith.constant 2 : i32
    %0 = arith.addi %c2_i32, %arg1 : i32
    %c0_i32 = arith.constant 0 : i32
    return %arg0, %0 : i32, i32
  }
  func.func @transform_3(%arg0: i32, %arg1: i32) -> (i32, i32) {
    %c0_i32 = arith.constant 0 : i32
    return %arg0, %arg1 : i32, i32
  }
}

module attributes {stable_mosaic.version = 11 : i64} {
  func.func @_ln_qkv_kernel(%arg0: i32, %arg1: i32, %arg2: memref<16x128xf32, #tpu.memory_space<vmem>>, %arg3: memref<1x128xf32, #tpu.memory_space<vmem>>, %arg4: memref<1x128xf32, #tpu.memory_space<vmem>>, %arg5: memref<128x384xbf16, #tpu.memory_space<vmem>>, %arg6: memref<1x384xf32, #tpu.memory_space<vmem>>, %arg7: memref<16x384xbf16, #tpu.memory_space<vmem>>) attributes {dimension_semantics = [#tpu.dimension_semantics<parallel>, #tpu.dimension_semantics<parallel>], iteration_bounds = array<i64: 1, 1>, scalar_prefetch = 0 : i64, scratch_operands = 0 : i64, tpu.core_type = #tpu.core_type<tc>, window_params = [{transform_indices = @transform_0, window_bounds = array<i64: 16, 128>}, {pipeline_mode = #tpu.pipeline_mode<synchronous>, transform_indices = @transform_1, window_bounds = array<i64: 1, 128>}, {pipeline_mode = #tpu.pipeline_mode<synchronous>, transform_indices = @transform_2, window_bounds = array<i64: 1, 128>}, {transform_indices = @transform_3, window_bounds = array<i64: 128, 384>}, {transform_indices = @transform_4, window_bounds = array<i64: 1, 384>}, {transform_indices = @transform_5, window_bounds = array<i64: 16, 384>}]} {
    %c0 = arith.constant 0 : index
    %c0_0 = arith.constant 0 : index
    %0 = vector.load %arg2[%c0, %c0_0] : memref<16x128xf32, #tpu.memory_space<vmem>>, vector<16x128xf32>
    %cst = arith.constant dense<0.000000e+00> : vector<16xf32>
    %1 = vector.multi_reduction <add>, %0, %cst [1] : vector<16x128xf32> to vector<16xf32>
    %2 = vector.shape_cast %1 : vector<16xf32> to vector<16x1xf32>
    %cst_1 = arith.constant 1.280000e+02 : f32
    %3 = vector.broadcast %cst_1 : f32 to vector<16x1xf32>
    %4 = arith.divf %2, %3 : vector<16x1xf32>
    %5 = vector.broadcast %4 : vector<16x1xf32> to vector<16x128xf32>
    %6 = arith.subf %0, %5 : vector<16x128xf32>
    %7 = arith.mulf %6, %6 : vector<16x128xf32>
    %cst_2 = arith.constant dense<0.000000e+00> : vector<16xf32>
    %8 = vector.multi_reduction <add>, %7, %cst_2 [1] : vector<16x128xf32> to vector<16xf32>
    %9 = vector.shape_cast %8 : vector<16xf32> to vector<16x1xf32>
    %cst_3 = arith.constant 1.280000e+02 : f32
    %10 = vector.broadcast %cst_3 : f32 to vector<16x1xf32>
    %11 = arith.divf %9, %10 : vector<16x1xf32>
    %cst_4 = arith.constant 9.99999974E-6 : f32
    %12 = vector.broadcast %cst_4 : f32 to vector<16x1xf32>
    %13 = arith.addf %11, %12 : vector<16x1xf32>
    %14 = math.rsqrt %13 : vector<16x1xf32>
    %15 = vector.broadcast %14 : vector<16x1xf32> to vector<16x128xf32>
    %16 = arith.mulf %6, %15 : vector<16x128xf32>
    %c0_5 = arith.constant 0 : index
    %c0_6 = arith.constant 0 : index
    %17 = vector.load %arg3[%c0_5, %c0_6] : memref<1x128xf32, #tpu.memory_space<vmem>>, vector<1x128xf32>
    %18 = vector.broadcast %17 : vector<1x128xf32> to vector<16x128xf32>
    %19 = arith.mulf %16, %18 : vector<16x128xf32>
    %c0_7 = arith.constant 0 : index
    %c0_8 = arith.constant 0 : index
    %20 = vector.load %arg4[%c0_7, %c0_8] : memref<1x128xf32, #tpu.memory_space<vmem>>, vector<1x128xf32>
    %21 = vector.broadcast %20 : vector<1x128xf32> to vector<16x128xf32>
    %22 = arith.addf %19, %21 : vector<16x128xf32>
    %23 = arith.truncf %22 : vector<16x128xf32> to vector<16x128xbf16>
    %c0_9 = arith.constant 0 : index
    %c0_10 = arith.constant 0 : index
    %24 = vector.load %arg5[%c0_9, %c0_10] : memref<128x384xbf16, #tpu.memory_space<vmem>>, vector<128x384xbf16>
    %cst_11 = arith.constant dense<0.000000e+00> : vector<16x384xf32>
    %25 = tpu.matmul %23, %24, %cst_11 {dimension_numbers = #tpu.dot_dimension_numbers<[1], [0], [0], [1], [0, 0, 1, 1], [], []>} : vector<16x128xbf16>, vector<128x384xbf16>, vector<16x384xf32> -> vector<16x384xf32>
    %c0_12 = arith.constant 0 : index
    %c0_13 = arith.constant 0 : index
    %26 = vector.load %arg6[%c0_12, %c0_13] : memref<1x384xf32, #tpu.memory_space<vmem>>, vector<1x384xf32>
    %27 = vector.broadcast %26 : vector<1x384xf32> to vector<16x384xf32>
    %28 = arith.addf %25, %27 : vector<16x384xf32>
    %29 = arith.truncf %28 : vector<16x384xf32> to vector<16x384xbf16>
    %c0_14 = arith.constant 0 : index
    %c0_15 = arith.constant 0 : index
    %30 = vector.load %arg7[%c0_14, %c0_15] : memref<16x384xbf16, #tpu.memory_space<vmem>>, vector<16x384xbf16>
    tpu.vector_store %arg7[%c0_14, %c0_15], %29 {strides = array<i32>} : memref<16x384xbf16, #tpu.memory_space<vmem>>, vector<16x384xbf16>,
    return
  }
  func.func @transform_0(%arg0: i32, %arg1: i32) -> (i32, i32) {
    %c0_i32 = arith.constant 0 : i32
    %c0_i32_0 = arith.constant 0 : i32
    return %arg0, %c0_i32 : i32, i32
  }
  func.func @transform_1(%arg0: i32, %arg1: i32) -> (i32, i32) {
    %c0_i32 = arith.constant 0 : i32
    %c0_i32_0 = arith.constant 0 : i32
    %c0_i32_1 = arith.constant 0 : i32
    return %c0_i32, %c0_i32_0 : i32, i32
  }
  func.func @transform_2(%arg0: i32, %arg1: i32) -> (i32, i32) {
    %c0_i32 = arith.constant 0 : i32
    %c0_i32_0 = arith.constant 0 : i32
    %c0_i32_1 = arith.constant 0 : i32
    return %c0_i32, %c0_i32_0 : i32, i32
  }
  func.func @transform_3(%arg0: i32, %arg1: i32) -> (i32, i32) {
    %c0_i32 = arith.constant 0 : i32
    %c0_i32_0 = arith.constant 0 : i32
    return %c0_i32, %arg1 : i32, i32
  }
  func.func @transform_4(%arg0: i32, %arg1: i32) -> (i32, i32) {
    %c0_i32 = arith.constant 0 : i32
    %c0_i32_0 = arith.constant 0 : i32
    return %c0_i32, %arg1 : i32, i32
  }
  func.func @transform_5(%arg0: i32, %arg1: i32) -> (i32, i32) {
    %c0_i32 = arith.constant 0 : i32
    return %arg0, %arg1 : i32, i32
  }
}

module attributes {stable_mosaic.version = 11 : i64} {
  func.func @_mlp_kernel_resident(%arg0: i32, %arg1: memref<16x128xbf16, #tpu.memory_space<vmem>>, %arg2: memref<128x512xbf16, #tpu.memory_space<vmem>>, %arg3: memref<1x512xf32, #tpu.memory_space<vmem>>, %arg4: memref<512x128xbf16, #tpu.memory_space<vmem>>, %arg5: memref<16x128xf32, #tpu.memory_space<vmem>>, %arg6: memref<16x128xf32, #tpu.memory_space<vmem>>) attributes {dimension_semantics = [#tpu.dimension_semantics<parallel>], iteration_bounds = array<i64: 1>, scalar_prefetch = 0 : i64, scratch_operands = 0 : i64, tpu.core_type = #tpu.core_type<tc>, window_params = [{transform_indices = @transform_0, window_bounds = array<i64: 16, 128>}, {pipeline_mode = #tpu.pipeline_mode<synchronous>, transform_indices = @transform_1, window_bounds = array<i64: 128, 512>}, {pipeline_mode = #tpu.pipeline_mode<synchronous>, transform_indices = @transform_2, window_bounds = array<i64: 1, 512>}, {pipeline_mode = #tpu.pipeline_mode<synchronous>, transform_indices = @transform_3, window_bounds = array<i64: 512, 128>}, {transform_indices = @transform_4, window_bounds = array<i64: 16, 128>}, {transform_indices = @transform_5, window_bounds = array<i64: 16, 128>}]} {
    %c0 = arith.constant 0 : index
    %c0_0 = arith.constant 0 : index
    %0 = vector.load %arg1[%c0, %c0_0] : memref<16x128xbf16, #tpu.memory_space<vmem>>, vector<16x128xbf16>
    %c0_1 = arith.constant 0 : index
    %c0_2 = arith.constant 0 : index
    %1 = vector.load %arg2[%c0_1, %c0_2] : memref<128x512xbf16, #tpu.memory_space<vmem>>, vector<128x512xbf16>
    %cst = arith.constant dense<0.000000e+00> : vector<16x512xf32>
    %2 = tpu.matmul %0, %1, %cst {dimension_numbers = #tpu.dot_dimension_numbers<[1], [0], [0], [1], [0, 0, 1, 1], [], []>} : vector<16x128xbf16>, vector<128x512xbf16>, vector<16x512xf32> -> vector<16x512xf32>
    %c0_3 = arith.constant 0 : index
    %c0_4 = arith.constant 0 : index
    %3 = vector.load %arg3[%c0_3, %c0_4] : memref<1x512xf32, #tpu.memory_space<vmem>>, vector<1x512xf32>
    %4 = vector.broadcast %3 : vector<1x512xf32> to vector<16x512xf32>
    %5 = arith.addf %2, %4 : vector<16x512xf32>
    %cst_5 = arith.constant 1.702000e+00 : f32
    %6 = vector.broadcast %cst_5 : f32 to vector<16x512xf32>
    %7 = arith.mulf %6, %5 : vector<16x512xf32>
    %8 = arith.negf %7 : vector<16x512xf32>
    %9 = math.exp %8 : vector<16x512xf32>
    %cst_6 = arith.constant 1.000000e+00 : f32
    %10 = vector.broadcast %cst_6 : f32 to vector<16x512xf32>
    %11 = arith.addf %10, %9 : vector<16x512xf32>
    %12 = arith.divf %10, %11 : vector<16x512xf32>
    %13 = arith.mulf %5, %12 : vector<16x512xf32>
    %14 = arith.truncf %13 : vector<16x512xf32> to vector<16x512xbf16>
    %c0_7 = arith.constant 0 : index
    %c0_8 = arith.constant 0 : index
    %15 = vector.load %arg5[%c0_7, %c0_8] : memref<16x128xf32, #tpu.memory_space<vmem>>, vector<16x128xf32>
    %c0_9 = arith.constant 0 : index
    %c0_10 = arith.constant 0 : index
    %16 = vector.load %arg4[%c0_9, %c0_10] : memref<512x128xbf16, #tpu.memory_space<vmem>>, vector<512x128xbf16>
    %cst_11 = arith.constant dense<0.000000e+00> : vector<16x128xf32>
    %17 = tpu.matmul %14, %16, %cst_11 {dimension_numbers = #tpu.dot_dimension_numbers<[1], [0], [0], [1], [0, 0, 1, 1], [], []>} : vector<16x512xbf16>, vector<512x128xbf16>, vector<16x128xf32> -> vector<16x128xf32>
    %18 = arith.addf %15, %17 : vector<16x128xf32>
    %c0_12 = arith.constant 0 : index
    %c0_13 = arith.constant 0 : index
    %19 = vector.load %arg6[%c0_12, %c0_13] : memref<16x128xf32, #tpu.memory_space<vmem>>, vector<16x128xf32>
    tpu.vector_store %arg6[%c0_12, %c0_13], %18 {strides = array<i32>} : memref<16x128xf32, #tpu.memory_space<vmem>>, vector<16x128xf32>,
    return
  }
  func.func @transform_0(%arg0: i32) -> (i32, i32) {
    %c0_i32 = arith.constant 0 : i32
    %c0_i32_0 = arith.constant 0 : i32
    return %arg0, %c0_i32 : i32, i32
  }
  func.func @transform_1(%arg0: i32) -> (i32, i32) {
    %c0_i32 = arith.constant 0 : i32
    %c0_i32_0 = arith.constant 0 : i32
    %c0_i32_1 = arith.constant 0 : i32
    return %c0_i32, %c0_i32_0 : i32, i32
  }
  func.func @transform_2(%arg0: i32) -> (i32, i32) {
    %c0_i32 = arith.constant 0 : i32
    %c0_i32_0 = arith.constant 0 : i32
    %c0_i32_1 = arith.constant 0 : i32
    return %c0_i32, %c0_i32_0 : i32, i32
  }
  func.func @transform_3(%arg0: i32) -> (i32, i32) {
    %c0_i32 = arith.constant 0 : i32
    %c0_i32_0 = arith.constant 0 : i32
    %c0_i32_1 = arith.constant 0 : i32
    return %c0_i32, %c0_i32_0 : i32, i32
  }
  func.func @transform_4(%arg0: i32) -> (i32, i32) {
    %c0_i32 = arith.constant 0 : i32
    %c0_i32_0 = arith.constant 0 : i32
    return %arg0, %c0_i32 : i32, i32
  }
  func.func @transform_5(%arg0: i32) -> (i32, i32) {
    %c0_i32 = arith.constant 0 : i32
    %c0_i32_0 = arith.constant 0 : i32
    return %arg0, %c0_i32 : i32, i32
  }
}

</mosaic_0001>

<bundles_post_ra>
// kernel: transformer_layer.6
= control target key start
LH: loop header
LB: loop body
LE: loop exit
PB: predicated region body
PF: predicated region fallthrough
CT: control target
= control target key end

     0   :  { %v265_v0 = vmov 0.0   ;;  %vm266_vm0 = vmmov 0   ;;  %s350_s1 = inlined_call_operand.vmem [shape: bf16[128,128], index: 1, kind: input, shape index: {}]   ;;  %s351_s0 = inlined_call_operand.vmem [shape: bf16[16,128], index: 0, kind: input, shape index: {}]   ;;  %s352_s2 = inlined_call_operand.vmem [shape: f32[16,128], index: 2, kind: input, shape index: {}]   ;;  %s353_s5 = inlined_call_operand.vmem [shape: f32[16,128], index: 5, kind: output, shape index: {0}]   ;;  %s354_s3 = inlined_call_operand.vmem [shape: f32[1,128], index: 3, kind: input, shape index: {}]   ;;  %s355_s4 = inlined_call_operand.vmem [shape: f32[1,128], index: 4, kind: input, shape index: {}]   ;;  %s356_s6 = inlined_call_operand.vmem [shape: bf16[16,128], index: 6, kind: output, shape index: {1}]  }
   0x1   :  { %230 = vmatprep.subr.bf16.mxu0 %v265_v0  ;;  %v252_v1 = vld [vmem:[%s350_s1] sm:$0xff]   ;;  %246 = vmatprep.mubr.msk.bf16.mxu0 %vm266_vm0, %v265_v0  ;;  %v253_v2 = vld [vmem:[%s350_s1 + $0x8] sm:$0xff]   ;;  %v254_v3 = vld [vmem:[%s350_s1 + $0x10] sm:$0xff]  }
   0x2   :  { %231 = vmatpush3.bf16.msra.mxu0 %v252_v1  ;;  %v255_v4 = vld [vmem:[%s350_s1 + $0x18] sm:$0xff]   ;;  %v256_v5 = vld [vmem:[%s350_s1 + $0x20] sm:$0xff]   ;;  %v257_v6 = vld [vmem:[%s350_s1 + $0x28] sm:$0xff]  }
   0x3   :  { %232 = vmatprep.subr.bf16.mxu0 %v265_v0  ;;  %v258_v7 = vld [vmem:[%s350_s1 + $0x30] sm:$0xff]   ;;  %v259_v8 = vld [vmem:[%s350_s1 + $0x38] sm:$0xff]   ;;  %v260_v9 = vld [vmem:[%s351_s0] sm:$0xff]  }
   0x4   :  { %v136_v10 = vld [vmem:[%s352_s2] sm:$0xff]  ;;  %v137_v12 = vld [vmem:[%s352_s2 + $0x8] sm:$0xff] }
   0x5   :  { %v210_v34 = vld [vmem:[%s354_s3] ss:$0 sm:$0xff] }
   0x6   :  { %233 = vmatpush3.bf16.msra.mxu0 %v253_v2  ;;  %v211_v38 = vld [vmem:[%s355_s4] ss:$0 sm:$0xff] }
   0x7   :  { %234 = vmatprep.subr.bf16.mxu0 %v265_v0 }
   0xa   :  { %235 = vmatpush3.bf16.msra.mxu0 %v254_v3 }
   0xb   :  { %236 = vmatprep.subr.bf16.mxu0 %v265_v0 }
   0xe   :  { %237 = vmatpush3.bf16.msra.mxu0 %v255_v4 }
   0xf   :  { %238 = vmatprep.subr.bf16.mxu0 %v265_v0 }
  0x12   :  { %239 = vmatpush3.bf16.msra.mxu0 %v256_v5 }
  0x13   :  { %240 = vmatprep.subr.bf16.mxu0 %v265_v0 }
  0x16   :  { %241 = vmatpush3.bf16.msra.mxu0 %v257_v6 }
  0x17   :  { %242 = vmatprep.subr.bf16.mxu0 %v265_v0 }
  0x1a   :  { %243 = vmatpush3.bf16.msra.mxu0 %v258_v7 }
  0x1b   :  { %244 = vmatprep.subr.bf16.mxu0 %v265_v0 }
  0x1e   :  { %245 = vmatpush3.bf16.msra.mxu0 %v259_v8 }
  0x21   :  { %247 = vmatmul.mubr.bf16.vlgmr.msra.gmra.mrb[0].mxu0 %v260_v9 }
  0xf4   :  { %v129_v11 = vpop.f32.mrb[0].mxu0 }
  0xf5   :  { %v138_v13 = vadd.f32 %v136_v10, %v129_v11  ;;  %v248_v14 = vpop.f32.mrb[1].mxu0 }
  0xf6   :  { %v132_v15 = vpop.f32.mrb[2].mxu0 }
  0xf7   :  { %140 = vst [vmem:[%s353_s5] sm:$0xff] %v138_v13  ;;  %v139_v16 = vadd.f32 %v137_v12, %v132_v15  ;;  %142 = vadd.xlane.f32.xlu0 %v138_v13  ;;  %v249_v17 = vpop.f32.mrb[3].mxu0 }
  0xf9   :  { %141 = vst [vmem:[%s353_s5 + $0x8] sm:$0xff] %v139_v16 }
  0xfb   :  { %144 = vadd.xlane.f32.xlu0 %v139_v16 }
 0x184   :  { %v143_v18 = vpop.xlane.xlu0 %142 }
 0x185   :  { %v147_v19 = vmul.f32 0.0078125, %v143_v18 }
 0x187   :  { %v149_v20 = vsub.f32 %v138_v13, %v147_v19 }
 0x188   :  { %v145_v21 = vpop.xlane.xlu0 %144 }
 0x189   :  { %v148_v22 = vmul.f32 0.0078125, %v145_v21  ;;  %v151_v23 = vmul.f32 %v149_v20, %v149_v20 }
 0x18b   :  { %v150_v24 = vsub.f32 %v139_v16, %v148_v22  ;;  %153 = vadd.xlane.f32.xlu1 %v151_v23 }
 0x18d   :  { %v152_v25 = vmul.f32 %v150_v24, %v150_v24 }
 0x18f   :  { %155 = vadd.xlane.f32.xlu1 %v152_v25 }
 0x218   :  { %v154_v26 = vpop.xlane.xlu1 %153 }
 0x219   :  { %v157_v27 = vmul.f32 0.0078125, %v154_v26 }
 0x21b   :  { %v159_v28 = vadd.f32 1e-05, %v157_v27 }
 0x21c   :  { %v156_v29 = vpop.xlane.xlu1 %155 }
 0x21d   :  { %261 = vrsqrt.f32 %v159_v28  ;;  %v158_v30 = vmul.f32 0.0078125, %v156_v29 }
 0x21f   :  { %v160_v31 = vadd.f32 1e-05, %v158_v30 }
 0x221   :  { %263 = vrsqrt.f32 %v160_v31 }
 0x227   :  { %v262_v32 = vpop.eup %261 }
 0x228   :  { %v163_v33 = vmul.f32 %v262_v32, %v149_v20 }
 0x22a   :  { %v172_v36 = vmul.f32 %v210_v34, %v163_v33 }
 0x22b   :  { %v264_v35 = vpop.eup %263 }
 0x22c   :  { %v164_v37 = vmul.f32 %v264_v35, %v150_v24  ;;  %v181_v40 = vadd.f32 %v211_v38, %v172_v36 }
 0x22e   :  { %v173_v39 = vmul.f32 %v210_v34, %v164_v37 }
 0x230   :  { %v182_v41 = vadd.f32 %v211_v38, %v173_v39 }
 0x232   :  { %v219_v42 = vpack.c.bf16 %v182_v41, %v181_v40 }
 0x234   :  { %220 = vst [vmem:[%s356_s6] sm:$0xff] %v219_v42  }

// kernel: transformer_layer.5
= control target key start
LH: loop header
LB: loop body
LE: loop exit
PB: predicated region body
PF: predicated region fallthrough
CT: control target
= control target key end

     0   :  { %s777_s12 = smov 0   ;;  %s779_s13 = smov 0   ;;  %s849_s0 = inlined_call_operand.vmem [shape: bf16[16,384], index: 0, kind: input, shape index: {}, may-alias: {0,1,2}]   ;;  %s850_s1 = inlined_call_operand.vmem [shape: bf16[16,384], index: 1, kind: input, shape index: {}, may-alias: {0,1,2}]   ;;  %s851_s2 = inlined_call_operand.vmem [shape: bf16[16,384], index: 2, kind: input, shape index: {}, may-alias: {0,1,2}]   ;;  %s852_s3 = inlined_call_operand.vmem [shape: bf16[16,128], index: 3, kind: output, shape index: {}]  }
   0x1   :  { %s781_s14 = smov 0  }
   0x2 LB: > { %s25_s15 = sadd.s32 1, %s748_s13  ;;  %p637_p0 = scmp.ge.s32.totalorder %s752_s14, 1  ;;  %s752_s14 = sphi %s781_s14, %s13_s14   ;;  %s748_s13 = sphi %s779_s13, %s854_s13   ;;  %s744_s12 = sphi %s777_s12, %s853_s12  }
   0x3   : > { %p27_p1 = scmp.ge.s32.totalorder %s25_s15, 2  ;;  %p194_p2 = scmp.lt.s32.totalorder %s752_s14, 3 }
   0x5   : > { %s856_s15 = smov (%p27_p1, %s25_s15), 0  ;;  %p195_p3 = pnand %p637_p0, %p194_p2 }
   0x6   : > { %p241_p4 = scmp.lt.s32.totalorder (!%p195_p3), %s744_s12, 1  ;;  %v754_v0 = vmov (!%p195_p3), 0.0   ;;  %vm755_vm0 = vmmov (!%p195_p3), 0   ;;  %vm280_vm1 = vcmask (!%p195_p3), 523264   ;;  %vm328_vm2 = vcmask (!%p195_p3), 64512   ;;  %s756_s24 = smov (!%p195_p3), 64  }
   0x7   : > { %198 = sbr.rel (%p195_p3) target bundleno = 1426 (0x592), region = 32  ;;  %665 = vmatprep.subr.bf16.mxu0 (!%p195_p3), %v754_v0  ;;  %667 = vmatprep.mubr.msk.bf16.mxu0 (!%p195_p3), %vm755_vm0, %v754_v0  ;;  %vm344_vm3 = vcmask (!%p195_p3), 1043456   ;;  %vm389_vm4 = vcmask (!%p195_p3), 519168   ;;  %vm518_vm5 = vcmask (!%p195_p3), 1043968  }
   0x8   : > { %671 = vmatprep.subr.bf16.mxu1 (!%p195_p3), %v754_v0  ;;  %673 = vmatprep.mubr.msk.bf16.mxu1 (!%p195_p3), %vm755_vm0, %v754_v0 }
   0xe   : > { %s858_s12 = smov (!%p241_p4, %s744_s12), 1 }
   0xf   : > { %s800_s16 = smul.u32 12, %s858_s12  ;;  %s641_s29 = sshll.u32 %s858_s12, 2 }
  0x10   : > { %s830_s5 = scalar_lea.vmem %s852_s3, %s641_s29 }
  0x11   : > { %s653_s17 = sadd.s32 4, %s800_s16  ;;  %s248_s23 = scalar_lea.vmem %s849_s0, %s800_s16 }
  0x12   : > { %s257_s20 = scalar_lea.vmem %s850_s1, %s653_s17  ;;  %v277_v3 = vld [vmem:[%s248_s23] sm:$0xf]  ;;  %s655_s25 = sadd.s32 8, %s800_s16 }
  0x13   : > { %v278_v1 = vld [vmem:[%s257_s20] sm:$0xf]  ;;  %v644_v11 = vcombine.low %v277_v3, %v277_v3  ;;  %s267_s28 = scalar_lea.vmem %s851_s2, %s655_s25 }
  0x14   : > { %v285_v2 = vsel %vm280_vm1, %v278_v1, 0  ;;  %v645_v10 = vcombine.low %v278_v1, %v278_v1  ;;  %v279_v17 = vld [vmem:[%s267_s28] sm:$0xf] }
  0x15   : > { %666 = vmatpush3.bf16.xpose.msra.mxu0 %v285_v2  ;;  %v346_v18 = vsel %vm344_vm3, %v279_v17, 0  ;;  %v647_v37 = vcombine.low %v279_v17, %v279_v17 }
  0x16   : > { %683 = vmatprep.subr.bf16.mxu0 %v754_v0  ;;  %399 = vrot.lane.b32.xlu1 %v645_v10, %s756_s24 }
  0x17   : > { %672 = vmatpush3.bf16.msra.mxu1 %v346_v18 }
  0x18   : > { %677 = vmatprep.subr.bf16.mxu1 %v754_v0 }
  0x1a   : > { %394 = vrot.lane.b32.xlu1 %v644_v11, %s756_s24 }
  0x1c   : > { %668 = vmatmul.mubr.msk.bf16.vlgmr.msra.gmra.mrb[0].mxu0 %vm280_vm1, %v277_v3 }
  0x1d   : > { %685 = vmatprep.mubr.msk.bf16.mxu0 %vm755_vm0, %v754_v0 }
  0x88   : > { %v400_v21 = vpop.permute.xlu1 %399 }
  0x89   : > { %v405_v23 = vsel %vm280_vm1, %v400_v21, 0 }
  0x8c   : > { %v395_v25 = vpop.permute.xlu1 %394 }
  0xef   : > { %v321_v4 = vpop.f32.mrb[0].mxu0 }
  0xf0   : > { %v327_v5 = vmul.f32 0.125, %v321_v4  ;;  %v669_v6 = vpop.f32.mrb[1].mxu0 }
  0xf1   : > { %v324_v7 = vpop.f32.mrb[2].mxu0 }
  0xf2   : > { %v670_v8 = vpop.f32.mrb[3].mxu0  ;;  %v329_v9 = vsel %vm328_vm2, %v327_v5, -inf }
  0xf3   : > { %330 = vmax.xlane.f32.xlu0 %v329_v9 }
 0x180   : > { %v331_v12 = vpop.xlane.xlu0 %330 }
 0x181   : > { %v332_v13 = vsub.f32 %v327_v5, %v331_v12 }
 0x183   : > { %v333_v14 = vmul.f32 1.442695, %v332_v13 }
 0x185   : > { %722 = vpow2.f32 %v333_v14 }
 0x18f   : > { %v723_v15 = vpop.eup %722 }
 0x190   : > { %v335_v16 = vsel %vm328_vm2, %v723_v15, 0.0 }
 0x191   : > { %336 = vadd.xlane.f32.xlu0 %v335_v16 }
 0x21e   : > { %v337_v19 = vpop.xlane.xlu0 %336 }
 0x21f   : > { %724 = vrcp.f32 %v337_v19 }
 0x229   : > { %v725_v20 = vpop.eup %724 }
 0x22a   : > { %v339_v22 = vmul.f32 %v725_v20, %v723_v15 }
 0x22c   : > { %v340_v24 = vpack.c.bf16 %v339_v22, %v339_v22 }
 0x22e   : > { %674 = vmatmul.mubr.msk.bf16.vlgmr.msra.gmra.mrb[0].mxu1 %vm328_vm2, %v340_v24 }
 0x22f   : > { %678 = vmatpush3.bf16.xpose.msra.mxu1 %v405_v23  ;;  %679 = vmatprep.mubr.msk.bf16.mxu1 %vm755_vm0, %v754_v0 }
 0x236   : > { %680 = vmatmul.mubr.msk.bf16.vlgmr.msra.gmra.mrb[4].mxu1 %vm280_vm1, %v395_v25 }
 0x301   : > { %v382_v26 = vpop.f32.mrb[0].mxu1 }
 0x302   : > { %v388_v27 = vpack.c.bf16 %v382_v26, %v382_v26  ;;  %v675_v28 = vpop.f32.mrb[1].mxu1 }
 0x303   : > { %v385_v29 = vpop.f32.mrb[2].mxu1 }
 0x304   : > { %390 = vst.msk [vmem:[%s830_s5] sm:$0xf] %vm389_vm4, %v388_v27  ;;  %v676_v30 = vpop.f32.mrb[3].mxu1 }
 0x309   : > { %v441_v31 = vpop.f32.mrb[4].mxu1 }
 0x30a   : > { %v447_v32 = vmul.f32 0.125, %v441_v31  ;;  %v681_v33 = vpop.f32.mrb[5].mxu1 }
 0x30b   : > { %v444_v34 = vpop.f32.mrb[6].mxu1 }
 0x30c   : > { %v682_v35 = vpop.f32.mrb[7].mxu1  ;;  %v448_v36 = vsel %vm328_vm2, %v447_v32, -inf }
 0x30d   : > { %449 = vmax.xlane.f32.xlu0 %v448_v36 }
 0x323   : > { %463 = vrot.lane.b32.xlu0 %v647_v37, %s756_s24 }
 0x39a   : > { %v450_v38 = vpop.xlane.xlu0 %449 }
 0x39b   : > { %v451_v39 = vsub.f32 %v447_v32, %v450_v38 }
 0x39d   : > { %v452_v40 = vmul.f32 1.442695, %v451_v39 }
 0x39e   : > { %v464_v43 = vpop.permute.xlu0 %463 }
 0x39f   : > { %726 = vpow2.f32 %v452_v40  ;;  %v469_v44 = vsel %vm344_vm3, %v464_v43, 0 }
 0x3a0   : > { %684 = vmatpush3.bf16.msra.mxu0 %v469_v44 }
 0x3a9   : > { %v727_v41 = vpop.eup %726 }
 0x3aa   : > { %v454_v42 = vsel %vm328_vm2, %v727_v41, 0.0 }
 0x3ab   : > { %455 = vadd.xlane.f32.xlu1 %v454_v42 }
 0x438   : > { %v456_v45 = vpop.xlane.xlu1 %455 }
 0x439   : > { %728 = vrcp.f32 %v456_v45 }
 0x443   : > { %v729_v46 = vpop.eup %728 }
 0x444   : > { %v458_v47 = vmul.f32 %v729_v46, %v727_v41 }
 0x446   : > { %v459_v48 = vpack.c.bf16 %v458_v47, %v458_v47 }
 0x448   : > { %686 = vmatmul.mubr.msk.bf16.vlgmr.msra.gmra.mrb[4].mxu0 %vm328_vm2, %v459_v48 }
 0x51b   : > { %v505_v49 = vpop.f32.mrb[4].mxu0 }
 0x51c   : > { %v656_v50 = vpack.c.bf16 %v505_v49, %v505_v49  ;;  %v687_v51 = vpop.f32.mrb[5].mxu0 }
 0x51d   : > { %v508_v52 = vpop.f32.mrb[6].mxu0 }
 0x51e   : > { %515 = vrot.lane.b32.xlu0 %v656_v50, %s756_s24  ;;  %v688_v53 = vpop.f32.mrb[7].mxu0 }
 0x590   : > { %v516_v54 = vpop.permute.xlu0 %515 }
 0x591   : > { %519 = vst.msk [vmem:[%s830_s5] sm:$0xf] %vm518_vm5, %v516_v54 }
 0x592 PF: > { %s13_s14 = sadd.s32 1, %s752_s14   ;;  %s853_s12 = smov %s748_s13 }
 0x593   : > { %p10_p5 = scmp.ge.s32.totalorder %s13_s14, 4   ;;  %s854_s13 = smov %s856_s15 }
 0x595   :  { %12 = sbr.rel (!%p10_p5) target bundleno = 2 (0x2), region = 68 }

// kernel: transformer_layer.4
= control target key start
LH: loop header
LB: loop body
LE: loop exit
PB: predicated region body
PF: predicated region fallthrough
CT: control target
= control target key end

     0   :  { %10 = vsyncpa [#allocation3], 0  ;;  %s749_s0 = inlined_call_operand.hbm [shape: f32[16,128], index: 0, kind: input, shape index: {}]   ;;  %s750_s1 = inlined_call_operand.hbm [shape: f32[1,128], index: 1, kind: input, shape index: {}]   ;;  %s751_s2 = inlined_call_operand.hbm [shape: f32[1,128], index: 2, kind: input, shape index: {}]   ;;  %s752_s3 = inlined_call_operand.hbm [shape: bf16[128,384], index: 3, kind: input, shape index: {}]   ;;  %s753_s4 = inlined_call_operand.vmem [shape: f32[1,384], index: 4, kind: input, shape index: {}]   ;;  %s754_s5 = inlined_call_operand.vmem [shape: bf16[16,384], index: 5, kind: output, shape index: {}]  }
   0x1   :  { %11 = vsyncpa [#allocation5], 0 }
   0x2   :  { %12 = vsyncpa [#allocation8], 0  ;;  %s612_s18 = smov [#allocation4]   ;;  %s613_s20 = smov [#allocation2]  }
   0x3   :  { %s31_s19 = sshll.u32 %s612_s18, 4  ;;  %s18_s21 = sshll.u32 %s613_s20, 4  ;;  %s32_s19 = int_to_ptr.vmem [resolvable:$true] %s31_s19  ;;  %s653_s21 = int_to_ptr.vmem [resolvable:$true] %s18_s21 }
   0x4   :  { %s518_s24 = scalar_lea.hbm %s750_s1, 16 }
   0x5   :  { %p519_p0 = scmp.ne.s32.totalorder %s750_s1, %s518_s24  ;;  %p522_p1 = scmp.lt.u32.totalorder %s518_s24, %s750_s1 }
   0x7   :  { %p524_p2 = pnand %p522_p1, %p519_p0 }
   0x9   :  { %527 = shalt.err (!%p524_p2)
}
   0xa   :  { %s528_s29 = scalar_lea.vmem %s32_s19, 16  ;;  %s532_s30 = scalar_lea.vmem %s32_s19, 32 }
   0xb   :  { %p529_p3 = scmp.ne.s32.totalorder %s32_s19, %s528_s29  ;;  %p533_p4 = scmp.lt.s32.totalorder %s32_s19, %s32_s19 }
   0xc   :  { %p534_p5 = scmp.lt.s32.totalorder %s532_s30, %s528_s29 }
   0xe   :  { %p535_p6 = por %p534_p5, %p533_p4 }
  0x10   :  { %p536_p7 = pnand %p535_p6, %p529_p3 }
  0x12   :  { %539 = shalt.err (!%p536_p7)
}
  0x13   :  { %34 = dma.hbm_to_vmem [thread:$0]  %s750_s1, 16, %s32_s19, [#allocation5]  }
  0x14   :  { %s540_s10 = scalar_lea.hbm %s749_s0, 256 }
  0x15   :  { %p541_p8 = scmp.ne.s32.totalorder %s749_s0, %s540_s10  ;;  %p544_p9 = scmp.lt.u32.totalorder %s540_s10, %s749_s0 }
  0x17   :  { %p546_p10 = pnand %p544_p9, %p541_p8 }
  0x19   :  { %549 = shalt.err (!%p546_p10)
}
  0x1a   :  { %s550_s15 = scalar_lea.vmem %s653_s21, 256  ;;  %p555_p12 = scmp.lt.s32.totalorder %s653_s21, %s653_s21 }
  0x1b   :  { %p551_p11 = scmp.ne.s32.totalorder %s653_s21, %s550_s15  ;;  %p556_p13 = scmp.lt.s32.totalorder %s550_s15, %s550_s15 }
  0x1d   :  { %p557_p0 = por %p556_p13, %p555_p12 }
  0x1f   :  { %p558_p1 = pnand %p557_p0, %p551_p11 }
  0x21   :  { %561 = shalt.err (!%p558_p1)
}
  0x22   :  { %s614_s1 = smov 128   ;;  %s615_s16 = smov 8  }
  0x23   :  { %24 = dma.hbm_to_vmem [thread:$0]  %s749_s0, 256, %s653_s21, [#allocation3], %s614_s1, %s614_s1, %s615_s16  }
  0x24   :  { %s616_s19 = smov [#allocation6]   ;;  %s617_s22 = smov [#allocation7]  }
  0x25   :  { %s41_s20 = sshll.u32 %s616_s19, 4  ;;  %s50_s23 = sshll.u32 %s617_s22, 4  ;;  %s42_s20 = int_to_ptr.vmem [resolvable:$true] %s41_s20  ;;  %s684_s23 = int_to_ptr.vmem [resolvable:$true] %s50_s23 }
  0x26   :  { %s562_s26 = scalar_lea.hbm %s751_s2, 16 }
  0x27   :  { %p563_p2 = scmp.ne.s32.totalorder %s751_s2, %s562_s26  ;;  %p566_p3 = scmp.lt.u32.totalorder %s562_s26, %s751_s2 }
  0x29   :  { %p568_p4 = pnand %p566_p3, %p563_p2 }
  0x2b   :  { %571 = shalt.err (!%p568_p4)
}
  0x2c   :  { %s572_s0 = scalar_lea.vmem %s42_s20, 16  ;;  %s576_s21 = scalar_lea.vmem %s42_s20, 32 }
  0x2d   :  { %p573_p5 = scmp.ne.s32.totalorder %s42_s20, %s572_s0  ;;  %p577_p6 = scmp.lt.s32.totalorder %s42_s20, %s42_s20 }
  0x2e   :  { %p578_p7 = scmp.lt.s32.totalorder %s576_s21, %s572_s0 }
  0x30   :  { %p579_p8 = por %p578_p7, %p577_p6 }
  0x32   :  { %p580_p9 = pnand %p579_p8, %p573_p5 }
  0x34   :  { %583 = shalt.err (!%p580_p9)
}
  0x35   :  { %44 = dma.hbm_to_vmem [thread:$0]  %s751_s2, 16, %s42_s20, [#allocation5]  }
  0x36   :  { %s584_s10 = scalar_lea.hbm %s752_s3, 3072 }
  0x37   :  { %p585_p10 = scmp.ne.s32.totalorder %s752_s3, %s584_s10  ;;  %p588_p11 = scmp.lt.u32.totalorder %s584_s10, %s752_s3 }
  0x39   :  { %p590_p12 = pnand %p588_p11, %p585_p10 }
  0x3b   :  { %593 = shalt.err (!%p590_p12)
}
  0x3c   :  { %s594_s15 = scalar_lea.vmem %s684_s23, 3072  ;;  %p599_p0 = scmp.lt.s32.totalorder %s684_s23, %s684_s23 }
  0x3d   :  { %p595_p13 = scmp.ne.s32.totalorder %s684_s23, %s594_s15  ;;  %p600_p1 = scmp.lt.s32.totalorder %s594_s15, %s594_s15 }
  0x3f   :  { %p601_p2 = por %p600_p1, %p599_p0 }
  0x41   :  { %p602_p3 = pnand %p601_p2, %p595_p13 }
  0x43   :  { %605 = shalt.err (!%p602_p3)
}
  0x44   :  { %s618_s2 = smov 192   ;;  %s619_s1 = smov 12  }
  0x45   :  { %56 = dma.hbm_to_vmem [thread:$0]  %s752_s3, 3072, %s684_s23, [#allocation8], %s618_s2, %s618_s2, %s619_s1  }
  0x46   :  { %606 = dma.done.wait [#allocation3], 256  }
  0x47   :  { %607 = vsyncadd [#allocation3], 4294967040 }
  0x48   :  { %608 = dma.done.wait [#allocation5], 32  }
  0x49   :  { %609 = vsyncadd [#allocation5], 4294967264 }
  0x4a   :  { %610 = dma.done.wait [#allocation8], 3072  }
  0x4b   :  { %611 = vsyncadd [#allocation8], 4294964224  ;;  %v72_v0 = vld [vmem:[#allocation2] sm:$0xff]  ;;  %v73_v1 = vld [vmem:[#allocation2 + $0x8] sm:$0xff]  ;;  %v620_v4 = vmov 0.0   ;;  %v621_v30 = vmov 0   ;;  %v150_v53 = vlaneseq }
  0x4c   :  { %74 = vadd.xlane.f32.xlu0 %v72_v0  ;;  %v482_v2 = vld [vmem:[#allocation7 + $0x4] ss:$12 sps:$4 sm:$0xff]   ;;  %v484_v3 = vld [vmem:[#allocation7] ss:$12 sps:$4 sm:$0xff]   ;;  %451 = vmatprep.subr.bf16.mxu1 %v620_v4  ;;  %v485_v5 = vld [vmem:[#allocation7 + $0x8] ss:$12 sps:$4 sm:$0xff]  }
  0x4d   :  { %v486_v6 = vld [vmem:[#allocation7 + $0x1c] ss:$12 sps:$4 sm:$0xff]   ;;  %293 = vmatprep.subr.bf16.mxu0 %v482_v2  ;;  %452 = vmatpush3.bf16.msra.mxu1 %v485_v5  ;;  %v488_v15 = vld [vmem:[#allocation7 + $0x18] ss:$12 sps:$4 sm:$0xff]   ;;  %v489_v16 = vld [vmem:[#allocation7 + $0x20] ss:$12 sps:$4 sm:$0xff]  }
  0x4e   :  { %294 = vmatpush1.bf16.msra.mxu0 %v484_v3  ;;  %453 = vmatprep.subr.bf16.mxu1 %v620_v4  ;;  %v490_v17 = vld [vmem:[#allocation7 + $0x34] ss:$12 sps:$4 sm:$0xff]   ;;  %v492_v18 = vld [vmem:[#allocation7 + $0x30] ss:$12 sps:$4 sm:$0xff]   ;;  %v493_v19 = vld [vmem:[#allocation7 + $0x38] ss:$12 sps:$4 sm:$0xff]  }
  0x4f   :  { %295 = vmatprep.subr.bf16.mxu0 %v486_v6  ;;  %v494_v20 = vld [vmem:[#allocation7 + $0x4c] ss:$12 sps:$4 sm:$0xff]   ;;  %v496_v21 = vld [vmem:[#allocation7 + $0x48] ss:$12 sps:$4 sm:$0xff]   ;;  %v497_v22 = vld [vmem:[#allocation7 + $0x50] ss:$12 sps:$4 sm:$0xff]   ;;  %325 = vmatprep.mubr.bf16.mxu0 %v621_v30 }
  0x50   :  { %76 = vadd.xlane.f32.xlu0 %v73_v1  ;;  %v498_v23 = vld [vmem:[#allocation7 + $0x64] ss:$12 sps:$4 sm:$0xff]   ;;  %v500_v24 = vld [vmem:[#allocation7 + $0x60] ss:$12 sps:$4 sm:$0xff]   ;;  %v501_v25 = vld [vmem:[#allocation7 + $0x68] ss:$12 sps:$4 sm:$0xff]  }
  0x51   :  { %454 = vmatpush3.bf16.msra.mxu1 %v489_v16  ;;  %v502_v26 = vld [vmem:[#allocation7 + $0x7c] ss:$12 sps:$4 sm:$0xff]   ;;  %v504_v27 = vld [vmem:[#allocation7 + $0x78] ss:$12 sps:$4 sm:$0xff]   ;;  %v505_v28 = vld [vmem:[#allocation7 + $0x80] ss:$12 sps:$4 sm:$0xff]  }
  0x52   :  { %296 = vmatpush1.bf16.msra.mxu0 %v488_v15  ;;  %455 = vmatprep.subr.bf16.mxu1 %v620_v4  ;;  %v506_v29 = vld [vmem:[#allocation7 + $0x94] ss:$12 sps:$4 sm:$0xff]   ;;  %vm622_vm0 = vmmov 0   ;;  %v508_v31 = vld [vmem:[#allocation7 + $0x90] ss:$12 sps:$4 sm:$0xff]   ;;  %v151_v54 = vshrl.u32 %v150_v53, 7 }
  0x53   :  { %297 = vmatprep.subr.bf16.mxu0 %v490_v17  ;;  %467 = vmatprep.mubr.msk.bf16.mxu1 %vm622_vm0, %v620_v4  ;;  %v509_v32 = vld [vmem:[#allocation7 + $0x98] ss:$12 sps:$4 sm:$0xff]   ;;  %v512_v34 = vld [vmem:[#allocation7 + $0xa8] ss:$12 sps:$4 sm:$0xff]   ;;  %v513_v35 = vld [vmem:[#allocation7 + $0xb0] ss:$12 sps:$4 sm:$0xff]  }
  0x54   :  { %v510_v33 = vld [vmem:[#allocation7 + $0xac] ss:$12 sps:$4 sm:$0xff]   ;;  %v408_v44 = vld [vmem:[#allocation4] ss:$0 sm:$0xff]  ;;  %v409_v48 = vld [vmem:[#allocation6] ss:$0 sm:$0xff] }
  0x55   :  { %456 = vmatpush3.bf16.msra.mxu1 %v493_v19  ;;  %v152_v55 = vsub.s32 0, %v151_v54  ;;  %v160_v56 = vsub.s32 2, %v151_v54  ;;  %v148_v57 = vld [vmem:[%s753_s4] sm:$0x7]  ;;  %v156_v58 = vsub.s32 1, %v151_v54 }
  0x56   :  { %298 = vmatpush1.bf16.msra.mxu0 %v492_v18  ;;  %457 = vmatprep.subr.bf16.mxu1 %v620_v4 }
  0x57   :  { %299 = vmatprep.subr.bf16.mxu0 %v494_v20  ;;  %v153_v59 = vrot.slane %v148_v57, %v152_v55  ;;  %v161_v60 = vrot.slane %v148_v57, %v160_v56  ;;  %v157_v61 = vrot.slane %v148_v57, %v156_v58 }
  0x59   :  { %458 = vmatpush3.bf16.msra.mxu1 %v497_v22 }
  0x5a   :  { %300 = vmatpush1.bf16.msra.mxu0 %v496_v21  ;;  %459 = vmatprep.subr.bf16.mxu1 %v620_v4 }
  0x5b   :  { %301 = vmatprep.subr.bf16.mxu0 %v498_v23 }
  0x5d   :  { %460 = vmatpush3.bf16.msra.mxu1 %v501_v25 }
  0x5e   :  { %302 = vmatpush1.bf16.msra.mxu0 %v500_v24  ;;  %461 = vmatprep.subr.bf16.mxu1 %v620_v4 }
  0x5f   :  { %303 = vmatprep.subr.bf16.mxu0 %v502_v26 }
  0x61   :  { %462 = vmatpush3.bf16.msra.mxu1 %v505_v28 }
  0x62   :  { %304 = vmatpush1.bf16.msra.mxu0 %v504_v27  ;;  %463 = vmatprep.subr.bf16.mxu1 %v620_v4 }
  0x63   :  { %305 = vmatprep.subr.bf16.mxu0 %v506_v29 }
  0x65   :  { %464 = vmatpush3.bf16.msra.mxu1 %v509_v32 }
  0x66   :  { %306 = vmatpush1.bf16.msra.mxu0 %v508_v31  ;;  %465 = vmatprep.subr.bf16.mxu1 %v620_v4 }
  0x67   :  { %307 = vmatprep.subr.bf16.mxu0 %v510_v33 }
  0x69   :  { %466 = vmatpush3.bf16.msra.mxu1 %v513_v35 }
  0x6a   :  { %308 = vmatpush1.bf16.msra.mxu0 %v512_v34 }
  0xd9   :  { %v75_v7 = vpop.xlane.xlu0 %74 }
  0xda   :  { %v79_v8 = vmul.f32 0.0078125, %v75_v7 }
  0xdc   :  { %v717_v9 = vsub.f32 %v72_v0, %v79_v8 }
  0xdd   :  { %v77_v10 = vpop.xlane.xlu0 %76 }
  0xde   :  { %v80_v11 = vmul.f32 0.0078125, %v77_v10  ;;  %v83_v12 = vmul.f32 %v717_v9, %v717_v9 }
  0xe0   :  { %v721_v13 = vsub.f32 %v73_v1, %v80_v11  ;;  %85 = vadd.xlane.f32.xlu1 %v83_v12 }
  0xe2   :  { %v84_v14 = vmul.f32 %v721_v13, %v721_v13 }
  0xe4   :  { %87 = vadd.xlane.f32.xlu1 %v84_v14 }
 0x16d   :  { %v86_v36 = vpop.xlane.xlu1 %85 }
 0x16e   :  { %v89_v37 = vmul.f32 0.0078125, %v86_v36 }
 0x170   :  { %v91_v38 = vadd.f32 1e-05, %v89_v37 }
 0x171   :  { %v88_v39 = vpop.xlane.xlu1 %87 }
 0x172   :  { %514 = vrsqrt.f32 %v91_v38  ;;  %v90_v40 = vmul.f32 0.0078125, %v88_v39 }
 0x174   :  { %v92_v41 = vadd.f32 1e-05, %v90_v40 }
 0x176   :  { %516 = vrsqrt.f32 %v92_v41 }
 0x17c   :  { %v515_v42 = vpop.eup %514 }
 0x17d   :  { %v95_v43 = vmul.f32 %v515_v42, %v717_v9 }
 0x17f   :  { %v104_v47 = vmul.f32 %v408_v44, %v95_v43 }
 0x180   :  { %v517_v45 = vpop.eup %516 }
 0x181   :  { %v96_v46 = vmul.f32 %v517_v45, %v721_v13  ;;  %v113_v50 = vadd.f32 %v409_v48, %v104_v47 }
 0x183   :  { %v105_v49 = vmul.f32 %v408_v44, %v96_v46 }
 0x185   :  { %v114_v51 = vadd.f32 %v409_v48, %v105_v49 }
 0x187   :  { %v115_v52 = vpack.c.bf16 %v114_v51, %v113_v50 }
 0x189   :  { %326 = vmatmul.mubr.bf16.vlgmr.msra.gmra.mrb[0].mxu0 %v115_v52  ;;  %468 = vmatmul.mubr.bf16.vlgmr.msra.gmra.mrb[0].mxu1 %v115_v52 }
 0x25c   :  { %v327_v62 = vpop.f32.mrb[0].mxu0  ;;  %v370_v63 = vpop.f32.mrb[0].mxu1 }
 0x25d   :  { %v328_v0 = vadd.f32 %v327_v62, %v153_v59  ;;  %v371_v1 = vadd.f32 %v370_v63, %v161_v60  ;;  %v329_v2 = vpop.f32.mrb[1].mxu0  ;;  %v469_v3 = vpop.f32.mrb[1].mxu1 }
 0x25e   :  { %v330_v4 = vadd.f32 %v329_v2, %v157_v61  ;;  %v331_v5 = vpop.f32.mrb[2].mxu0  ;;  %v373_v6 = vpop.f32.mrb[2].mxu1 }
 0x25f   :  { %v439_v7 = vpack.c.bf16 %v371_v1, %v371_v1  ;;  %v332_v8 = vadd.f32 %v331_v5, %v153_v59  ;;  %v374_v9 = vadd.f32 %v373_v6, %v161_v60  ;;  %v333_v10 = vpop.f32.mrb[3].mxu0  ;;  %v470_v11 = vpop.f32.mrb[3].mxu1 }
 0x260   :  { %v438_v12 = vpack.c.bf16 %v330_v4, %v328_v0  ;;  %v334_v13 = vadd.f32 %v333_v10, %v157_v61 }
 0x261   :  { %398 = vst [vmem:[%s754_s5 + $0x8] sm:$0xf] %v439_v7  ;;  %v441_v14 = vpack.c.bf16 %v374_v9, %v374_v9 }
 0x262   :  { %397 = vst [vmem:[%s754_s5] sm:$0xff] %v438_v12  ;;  %v440_v15 = vpack.c.bf16 %v334_v13, %v332_v8 }
 0x263   :  { %400 = vst [vmem:[%s754_s5 + $0x14] sm:$0xf] %v441_v14 }
 0x264   :  { %399 = vst [vmem:[%s754_s5 + $0xc] sm:$0xff] %v440_v15 }
 0x265   :  { %405 = vsyncpa [#allocation3], 1 }
 0x266   :  { %406 = vsyncpa [#allocation5], 1 }
 0x267   :  { %407 = vsyncpa [#allocation8], 1 }

// kernel: transformer_layer.7
= control target key start
LH: loop header
LB: loop body
LE: loop exit
PB: predicated region body
PF: predicated region fallthrough
CT: control target
= control target key end

     0   :  { %10 = vsyncpa [#allocation3], 0  ;;  %s1243_s0 = inlined_call_operand.vmem [shape: bf16[16,128], index: 0, kind: input, shape index: {}]   ;;  %s1244_s1 = inlined_call_operand.vmem [shape: bf16[128,512], index: 1, kind: input, shape index: {}]   ;;  %s1245_s2 = inlined_call_operand.vmem [shape: f32[1,512], index: 2, kind: input, shape index: {}]   ;;  %s1246_s3 = inlined_call_operand.hbm [shape: bf16[512,128], index: 3, kind: input, shape index: {}]   ;;  %s1247_s4 = inlined_call_operand.vmem [shape: f32[16,128], index: 4, kind: input, shape index: {}]   ;;  %s1248_s5 = inlined_call_operand.hbm [shape: f32[16,128], index: 5, kind: output, shape index: {}]  }
   0x1   :  { %11 = vsyncpa [#allocation4], 0  ;;  %s1058_s18 = smov [#allocation2]   ;;  %s1010_s22 = scalar_lea.hbm %s1246_s3, 4096 }
   0x2   :  { %s23_s19 = sshll.u32 %s1058_s18, 4  ;;  %p1011_p0 = scmp.ne.s32.totalorder %s1246_s3, %s1010_s22  ;;  %s24_s19 = int_to_ptr.vmem [resolvable:$true] %s23_s19 }
   0x3   :  { %p1014_p1 = scmp.lt.u32.totalorder %s1010_s22, %s1246_s3 }
   0x5   :  { %p1016_p2 = pnand %p1014_p1, %p1011_p0 }
   0x7   :  { %1019 = shalt.err (!%p1016_p2)
}
   0x8   :  { %s1020_s27 = scalar_lea.vmem %s24_s19, 4096  ;;  %p1025_p4 = scmp.lt.s32.totalorder %s24_s19, %s24_s19 }
   0x9   :  { %p1021_p3 = scmp.ne.s32.totalorder %s24_s19, %s1020_s27  ;;  %p1026_p5 = scmp.lt.s32.totalorder %s1020_s27, %s1020_s27 }
   0xb   :  { %p1027_p6 = por %p1026_p5, %p1025_p4 }
   0xd   :  { %p1028_p7 = pnand %p1027_p6, %p1021_p3 }
   0xf   :  { %1031 = shalt.err (!%p1028_p7)
}
  0x10   :  { %s1059_s28 = smov 64   ;;  %s1060_s29 = smov 4  }
  0x11   :  { %29 = dma.hbm_to_vmem [thread:$0]  %s1246_s3, 4096, %s24_s19, [#allocation3], %s1059_s28, %s1059_s28, %s1060_s29  }
  0x12   :  { %1054 = dma.done.wait [#allocation3], 4096  }
  0x13   :  { %1055 = vsyncadd [#allocation3], 4294963200  ;;  %v1061_v0 = vmov 0   ;;  %v897_v1 = vld [vmem:[%s1244_s1 + $0x4] ss:$16 sps:$4 sm:$0xff]   ;;  %v950_v38 = vld [vmem:[#allocation2 + $0x48] sm:$0xff]  }
  0x14   :  { %290 = vmatprep.mubr.bf16.mxu0 %v1061_v0  ;;  %333 = vmatprep.mubr.bf16.mxu1 %v1061_v0  ;;  %v899_v2 = vld [vmem:[%s1244_s1 + $0xc] ss:$16 sps:$4 sm:$0xff]   ;;  %v901_v3 = vld [vmem:[%s1244_s1] ss:$16 sps:$4 sm:$0xff]   ;;  %v902_v4 = vld [vmem:[%s1244_s1 + $0x8] ss:$16 sps:$4 sm:$0xff]  }
  0x15   :  { %258 = vmatprep.subr.bf16.mxu0 %v897_v1  ;;  %301 = vmatprep.subr.bf16.mxu1 %v899_v2  ;;  %v903_v5 = vld [vmem:[%s1244_s1 + $0x24] ss:$16 sps:$4 sm:$0xff]   ;;  %v905_v6 = vld [vmem:[%s1244_s1 + $0x2c] ss:$16 sps:$4 sm:$0xff]   ;;  %v907_v7 = vld [vmem:[%s1244_s1 + $0x20] ss:$16 sps:$4 sm:$0xff]   ;;  %v72_v2 = vlaneseq }
  0x16   :  { %259 = vmatpush1.bf16.msra.mxu0 %v901_v3  ;;  %302 = vmatpush1.bf16.msra.mxu1 %v902_v4  ;;  %v908_v8 = vld [vmem:[%s1244_s1 + $0x28] ss:$16 sps:$4 sm:$0xff]   ;;  %v909_v9 = vld [vmem:[%s1244_s1 + $0x44] ss:$16 sps:$4 sm:$0xff]   ;;  %v911_v10 = vld [vmem:[%s1244_s1 + $0x4c] ss:$16 sps:$4 sm:$0xff]  }
  0x17   :  { %260 = vmatprep.subr.bf16.mxu0 %v903_v5  ;;  %303 = vmatprep.subr.bf16.mxu1 %v905_v6  ;;  %v913_v11 = vld [vmem:[%s1244_s1 + $0x40] ss:$16 sps:$4 sm:$0xff]   ;;  %v914_v12 = vld [vmem:[%s1244_s1 + $0x48] ss:$16 sps:$4 sm:$0xff]   ;;  %v915_v13 = vld [vmem:[%s1244_s1 + $0x64] ss:$16 sps:$4 sm:$0xff]  }
  0x18   :  { %v917_v14 = vld [vmem:[%s1244_s1 + $0x6c] ss:$16 sps:$4 sm:$0xff]   ;;  %v919_v15 = vld [vmem:[%s1244_s1 + $0x60] ss:$16 sps:$4 sm:$0xff]   ;;  %v920_v16 = vld [vmem:[%s1244_s1 + $0x68] ss:$16 sps:$4 sm:$0xff]  }
  0x19   :  { %v921_v17 = vld [vmem:[%s1244_s1 + $0x84] ss:$16 sps:$4 sm:$0xff]   ;;  %v923_v18 = vld [vmem:[%s1244_s1 + $0x8c] ss:$16 sps:$4 sm:$0xff]   ;;  %v925_v19 = vld [vmem:[%s1244_s1 + $0x80] ss:$16 sps:$4 sm:$0xff]  }
  0x1a   :  { %261 = vmatpush1.bf16.msra.mxu0 %v907_v7  ;;  %304 = vmatpush1.bf16.msra.mxu1 %v908_v8  ;;  %v926_v20 = vld [vmem:[%s1244_s1 + $0x88] ss:$16 sps:$4 sm:$0xff]   ;;  %v927_v21 = vld [vmem:[%s1244_s1 + $0xa4] ss:$16 sps:$4 sm:$0xff]   ;;  %v929_v22 = vld [vmem:[%s1244_s1 + $0xac] ss:$16 sps:$4 sm:$0xff]  }
  0x1b   :  { %262 = vmatprep.subr.bf16.mxu0 %v909_v9  ;;  %305 = vmatprep.subr.bf16.mxu1 %v911_v10  ;;  %v931_v23 = vld [vmem:[%s1244_s1 + $0xa0] ss:$16 sps:$4 sm:$0xff]   ;;  %v932_v24 = vld [vmem:[%s1244_s1 + $0xa8] ss:$16 sps:$4 sm:$0xff]   ;;  %v933_v25 = vld [vmem:[%s1244_s1 + $0xc4] ss:$16 sps:$4 sm:$0xff]  }
  0x1c   :  { %v935_v26 = vld [vmem:[%s1244_s1 + $0xcc] ss:$16 sps:$4 sm:$0xff]   ;;  %v937_v27 = vld [vmem:[%s1244_s1 + $0xc0] ss:$16 sps:$4 sm:$0xff]   ;;  %v938_v28 = vld [vmem:[%s1244_s1 + $0xc8] ss:$16 sps:$4 sm:$0xff]  }
  0x1d   :  { %v939_v29 = vld [vmem:[%s1244_s1 + $0xe4] ss:$16 sps:$4 sm:$0xff]   ;;  %v941_v30 = vld [vmem:[%s1244_s1 + $0xec] ss:$16 sps:$4 sm:$0xff]   ;;  %v943_v31 = vld [vmem:[%s1244_s1 + $0xe0] ss:$16 sps:$4 sm:$0xff]  }
  0x1e   :  { %263 = vmatpush1.bf16.msra.mxu0 %v913_v11  ;;  %306 = vmatpush1.bf16.msra.mxu1 %v914_v12  ;;  %v944_v32 = vld [vmem:[%s1244_s1 + $0xe8] ss:$16 sps:$4 sm:$0xff]   ;;  %v945_v33 = vld [vmem:[%s1243_s0] sm:$0xff]   ;;  %v954_v42 = vld [vmem:[#allocation2 + $0x50] sm:$0xff]   ;;  %v73_v3 = vshrl.u32 %v72_v2, 7  ;;  %s1062_s21 = smov [#allocation5]  }
  0x1f   :  { %264 = vmatprep.subr.bf16.mxu0 %v915_v13  ;;  %307 = vmatprep.subr.bf16.mxu1 %v917_v14  ;;  %v946_v34 = vld [vmem:[#allocation2 + $0x40] sm:$0xff]   ;;  %v951_v39 = vld [vmem:[#allocation2 + $0xc8] sm:$0xff]   ;;  %v955_v43 = vld [vmem:[#allocation2 + $0xd0] sm:$0xff]   ;;  %s761_s22 = sshll.u32 %s1062_s21, 4  ;;  %s762_s22 = int_to_ptr.vmem [resolvable:$true] %s761_s22 }
  0x20   :  { %v947_v35 = vld [vmem:[#allocation2 + $0xc0] sm:$0xff]   ;;  %v952_v40 = vld [vmem:[#allocation2 + $0x8] sm:$0xff]   ;;  %v956_v44 = vld [vmem:[#allocation2 + $0x10] sm:$0xff]   ;;  %v74_v4 = vsub.s32 0, %v73_v3  ;;  %v82_v5 = vsub.s32 2, %v73_v3  ;;  %v78_v7 = vsub.s32 1, %v73_v3  ;;  %p1037_p9 = scmp.lt.s32.totalorder %s762_s22, %s762_s22 }
  0x21   :  { %v948_v36 = vld [vmem:[#allocation2] sm:$0xff]   ;;  %v953_v41 = vld [vmem:[#allocation2 + $0x88] sm:$0xff]   ;;  %v957_v45 = vld [vmem:[#allocation2 + $0x90] sm:$0xff]   ;;  %v86_v8 = vsub.s32 3, %v73_v3  ;;  %s1032_s25 = scalar_lea.vmem %s762_s22, 256 }
  0x22   :  { %265 = vmatpush1.bf16.msra.mxu0 %v919_v15  ;;  %308 = vmatpush1.bf16.msra.mxu1 %v920_v16  ;;  %v949_v37 = vld [vmem:[#allocation2 + $0x80] sm:$0xff]   ;;  %v958_v46 = vld [vmem:[#allocation2 + $0x58] sm:$0xff]   ;;  %v966_v54 = vld [vmem:[#allocation2 + $0x68] sm:$0xff]   ;;  %p1033_p8 = scmp.ne.s32.totalorder %s762_s22, %s1032_s25  ;;  %p1038_p10 = scmp.lt.s32.totalorder %s1032_s25, %s1032_s25 }
  0x23   :  { %266 = vmatprep.subr.bf16.mxu0 %v921_v17  ;;  %309 = vmatprep.subr.bf16.mxu1 %v923_v18  ;;  %v959_v47 = vld [vmem:[#allocation2 + $0xd8] sm:$0xff]   ;;  %v962_v50 = vld [vmem:[#allocation2 + $0x60] sm:$0xff]   ;;  %v967_v55 = vld [vmem:[#allocation2 + $0xe8] sm:$0xff]  }
  0x24   :  { %v960_v48 = vld [vmem:[#allocation2 + $0x18] sm:$0xff]   ;;  %v963_v51 = vld [vmem:[#allocation2 + $0xe0] sm:$0xff]   ;;  %v968_v56 = vld [vmem:[#allocation2 + $0x28] sm:$0xff]   ;;  %p1039_p11 = por %p1038_p10, %p1037_p9 }
  0x25   :  { %v961_v49 = vld [vmem:[#allocation2 + $0x98] sm:$0xff]   ;;  %v964_v52 = vld [vmem:[#allocation2 + $0x20] sm:$0xff]   ;;  %v969_v57 = vld [vmem:[#allocation2 + $0xa8] sm:$0xff]  }
  0x26   :  { %267 = vmatpush1.bf16.msra.mxu0 %v925_v19  ;;  %310 = vmatpush1.bf16.msra.mxu1 %v926_v20  ;;  %v965_v53 = vld [vmem:[#allocation2 + $0xa0] sm:$0xff]   ;;  %v970_v58 = vld [vmem:[#allocation2 + $0x70] sm:$0xff]   ;;  %v974_v62 = vld [vmem:[#allocation2 + $0x78] sm:$0xff]   ;;  %p1040_p12 = pnand %p1039_p11, %p1033_p8 }
  0x27   :  { %268 = vmatprep.subr.bf16.mxu0 %v927_v21  ;;  %311 = vmatprep.subr.bf16.mxu1 %v929_v22  ;;  %v971_v59 = vld [vmem:[#allocation2 + $0xf0] sm:$0xff]   ;;  %v975_v63 = vld [vmem:[#allocation2 + $0xf8] sm:$0xff]   ;;  %v70_v6 = vld [vmem:[%s1245_s2] sm:$0xf] }
  0x28   :  { %v972_v60 = vld [vmem:[#allocation2 + $0x30] sm:$0xff]   ;;  %v976_v0 = vld [vmem:[#allocation2 + $0x38] sm:$0xff]   ;;  %v75_v9 = vrot.slane %v70_v6, %v74_v4  ;;  %v83_v10 = vrot.slane %v70_v6, %v82_v5  ;;  %v79_v11 = vrot.slane %v70_v6, %v78_v7  ;;  %v87_v12 = vrot.slane %v70_v6, %v86_v8 }
  0x29   :  { %v973_v61 = vld [vmem:[#allocation2 + $0xb0] sm:$0xff]   ;;  %v977_v1 = vld [vmem:[#allocation2 + $0xb8] sm:$0xff]  }
  0x2a   :  { %269 = vmatpush1.bf16.msra.mxu0 %v931_v23  ;;  %312 = vmatpush1.bf16.msra.mxu1 %v932_v24 }
  0x2b   :  { %270 = vmatprep.subr.bf16.mxu0 %v933_v25  ;;  %313 = vmatprep.subr.bf16.mxu1 %v935_v26 }
  0x2e   :  { %271 = vmatpush1.bf16.msra.mxu0 %v937_v27  ;;  %314 = vmatpush1.bf16.msra.mxu1 %v938_v28 }
  0x2f   :  { %272 = vmatprep.subr.bf16.mxu0 %v939_v29  ;;  %315 = vmatprep.subr.bf16.mxu1 %v941_v30 }
  0x32   :  { %273 = vmatpush1.bf16.msra.mxu0 %v943_v31  ;;  %316 = vmatpush1.bf16.msra.mxu1 %v944_v32 }
  0x33   :  { %846 = vmatprep.subr.bf16.mxu0 %v946_v34  ;;  %868 = vmatprep.subr.bf16.mxu1 %v947_v35 }
  0x35   :  { %291 = vmatmul.mubr.bf16.vlgmr.msra.gmra.mrb[0].mxu0 %v945_v33  ;;  %334 = vmatmul.mubr.bf16.vlgmr.msra.gmra.mrb[0].mxu1 %v945_v33 }
  0x36   :  { %847 = vmatpush3.bf16.msra.mxu0 %v948_v36  ;;  %869 = vmatpush3.bf16.msra.mxu1 %v949_v37 }
  0x37   :  { %848 = vmatprep.subr.bf16.mxu0 %v950_v38  ;;  %870 = vmatprep.subr.bf16.mxu1 %v951_v39 }
  0x3a   :  { %849 = vmatpush3.bf16.msra.mxu0 %v952_v40  ;;  %871 = vmatpush3.bf16.msra.mxu1 %v953_v41 }
  0x3b   :  { %850 = vmatprep.subr.bf16.mxu0 %v954_v42  ;;  %872 = vmatprep.subr.bf16.mxu1 %v955_v43 }
  0x3e   :  { %851 = vmatpush3.bf16.msra.mxu0 %v956_v44  ;;  %873 = vmatpush3.bf16.msra.mxu1 %v957_v45 }
  0x3f   :  { %852 = vmatprep.subr.bf16.mxu0 %v958_v46  ;;  %874 = vmatprep.subr.bf16.mxu1 %v959_v47 }
  0x42   :  { %853 = vmatpush3.bf16.msra.mxu0 %v960_v48  ;;  %875 = vmatpush3.bf16.msra.mxu1 %v961_v49 }
  0x43   :  { %854 = vmatprep.subr.bf16.mxu0 %v962_v50  ;;  %876 = vmatprep.subr.bf16.mxu1 %v963_v51 }
  0x46   :  { %855 = vmatpush3.bf16.msra.mxu0 %v964_v52  ;;  %877 = vmatpush3.bf16.msra.mxu1 %v965_v53 }
  0x47   :  { %856 = vmatprep.subr.bf16.mxu0 %v966_v54  ;;  %878 = vmatprep.subr.bf16.mxu1 %v967_v55 }
  0x4a   :  { %857 = vmatpush3.bf16.msra.mxu0 %v968_v56  ;;  %879 = vmatpush3.bf16.msra.mxu1 %v969_v57 }
  0x4b   :  { %858 = vmatprep.subr.bf16.mxu0 %v970_v58  ;;  %880 = vmatprep.subr.bf16.mxu1 %v971_v59 }
  0x4e   :  { %859 = vmatpush3.bf16.msra.mxu0 %v972_v60  ;;  %881 = vmatpush3.bf16.msra.mxu1 %v973_v61 }
  0x4f   :  { %860 = vmatprep.subr.bf16.mxu0 %v974_v62  ;;  %882 = vmatprep.subr.bf16.mxu1 %v975_v63 }
  0x52   :  { %861 = vmatpush3.bf16.msra.mxu0 %v976_v0  ;;  %883 = vmatpush3.bf16.msra.mxu1 %v977_v1 }
 0x108   :  { %v292_v13 = vpop.f32.mrb[0].mxu0  ;;  %v335_v14 = vpop.f32.mrb[0].mxu1 }
 0x109   :  { %v1209_v15 = vadd.f32 %v292_v13, %v75_v9  ;;  %v1211_v16 = vadd.f32 %v335_v14, %v83_v10  ;;  %v294_v17 = vpop.f32.mrb[1].mxu0  ;;  %v337_v18 = vpop.f32.mrb[1].mxu1 }
 0x10a   :  { %v1213_v19 = vadd.f32 %v294_v17, %v79_v11  ;;  %v1215_v20 = vadd.f32 %v337_v18, %v87_v12  ;;  %v296_v21 = vpop.f32.mrb[2].mxu0  ;;  %v339_v22 = vpop.f32.mrb[2].mxu1 }
 0x10b   :  { %v806_v23 = vmul.f32 -1.702, %v1209_v15  ;;  %v808_v24 = vmul.f32 -1.702, %v1211_v16  ;;  %v297_v25 = vadd.f32 %v296_v21, %v75_v9  ;;  %v340_v26 = vadd.f32 %v339_v22, %v83_v10  ;;  %v298_v27 = vpop.f32.mrb[3].mxu0  ;;  %v341_v28 = vpop.f32.mrb[3].mxu1 }
 0x10c   :  { %v807_v29 = vmul.f32 -1.702, %v1213_v19  ;;  %v809_v30 = vmul.f32 -1.702, %v1215_v20  ;;  %v299_v31 = vadd.f32 %v298_v27, %v79_v11  ;;  %v342_v32 = vadd.f32 %v341_v28, %v87_v12 }
 0x10d   :  { %v360_v33 = vmul.f32 1.442695, %v806_v23  ;;  %v364_v34 = vmul.f32 1.442695, %v808_v24  ;;  %v810_v35 = vmul.f32 -1.702, %v297_v25 }
 0x10e   :  { %v362_v36 = vmul.f32 1.442695, %v807_v29  ;;  %v366_v37 = vmul.f32 1.442695, %v809_v30  ;;  %v812_v38 = vmul.f32 -1.702, %v340_v26 }
 0x10f   :  { %978 = vpow2.f32 %v360_v33  ;;  %v368_v39 = vmul.f32 1.442695, %v810_v35  ;;  %v811_v40 = vmul.f32 -1.702, %v299_v31  ;;  %v813_v41 = vmul.f32 -1.702, %v342_v32 }
 0x110   :  { %980 = vpow2.f32 %v364_v34  ;;  %v372_v42 = vmul.f32 1.442695, %v812_v38 }
 0x111   :  { %982 = vpow2.f32 %v362_v36  ;;  %v370_v43 = vmul.f32 1.442695, %v811_v40  ;;  %v374_v44 = vmul.f32 1.442695, %v813_v41 }
 0x112   :  { %984 = vpow2.f32 %v366_v37 }
 0x113   :  { %986 = vpow2.f32 %v368_v39 }
 0x114   :  { %988 = vpow2.f32 %v372_v42 }
 0x115   :  { %990 = vpow2.f32 %v370_v43 }
 0x116   :  { %992 = vpow2.f32 %v374_v44 }
 0x119   :  { %v979_v45 = vpop.eup %978 }
 0x11a   :  { %v981_v46 = vpop.eup %980  ;;  %v376_v47 = vadd.f32 1.0, %v979_v45 }
 0x11b   :  { %v983_v48 = vpop.eup %982  ;;  %v378_v49 = vadd.f32 1.0, %v981_v46 }
 0x11c   :  { %v985_v50 = vpop.eup %984  ;;  %994 = vrcp.f32 %v376_v47  ;;  %v377_v51 = vadd.f32 1.0, %v983_v48 }
 0x11d   :  { %v987_v52 = vpop.eup %986  ;;  %996 = vrcp.f32 %v378_v49  ;;  %v379_v53 = vadd.f32 1.0, %v985_v50 }
 0x11e   :  { %v989_v54 = vpop.eup %988  ;;  %998 = vrcp.f32 %v377_v51  ;;  %v380_v55 = vadd.f32 1.0, %v987_v52 }
 0x11f   :  { %v991_v56 = vpop.eup %990  ;;  %1000 = vrcp.f32 %v379_v53  ;;  %v382_v57 = vadd.f32 1.0, %v989_v54 }
 0x120   :  { %v993_v58 = vpop.eup %992  ;;  %1002 = vrcp.f32 %v380_v55  ;;  %v381_v59 = vadd.f32 1.0, %v991_v56 }
 0x121   :  { %1004 = vrcp.f32 %v382_v57  ;;  %v383_v60 = vadd.f32 1.0, %v993_v58 }
 0x122   :  { %1006 = vrcp.f32 %v381_v59 }
 0x123   :  { %1008 = vrcp.f32 %v383_v60 }
 0x126   :  { %v995_v61 = vpop.eup %994 }
 0x127   :  { %v997_v62 = vpop.eup %996  ;;  %v400_v3 = vmul.f32 %v995_v61, %v1209_v15 }
 0x128   :  { %v999_v63 = vpop.eup %998  ;;  %v402_v6 = vmul.f32 %v997_v62, %v1211_v16 }
 0x129   :  { %v1001_v0 = vpop.eup %1000  ;;  %v401_v9 = vmul.f32 %v999_v63, %v1213_v19 }
 0x12a   :  { %v1003_v1 = vpop.eup %1002  ;;  %v403_v12 = vmul.f32 %v1001_v0, %v1215_v20  ;;  %v412_v20 = vld [vmem:[%s1247_s4] sm:$0xff] }
 0x12b   :  { %v1005_v2 = vpop.eup %1004  ;;  %v404_v4 = vmul.f32 %v1003_v1, %v297_v25 }
 0x12c   :  { %v1007_v5 = vpop.eup %1006  ;;  %v406_v7 = vmul.f32 %v1005_v2, %v340_v26 }
 0x12d   :  { %v1009_v8 = vpop.eup %1008  ;;  %v408_v10 = vpack.c.bf16 %v404_v4, %v400_v3  ;;  %v405_v11 = vmul.f32 %v1007_v5, %v299_v31  ;;  %v413_v31 = vld [vmem:[%s1247_s4 + $0x8] sm:$0xff] }
 0x12e   :  { %v410_v13 = vpack.c.bf16 %v406_v7, %v402_v6  ;;  %v407_v14 = vmul.f32 %v1009_v8, %v342_v32 }
 0x12f   :  { %v409_v17 = vpack.c.bf16 %v405_v11, %v401_v9 }
 0x130   :  { %v411_v18 = vpack.c.bf16 %v407_v14, %v403_v12 }
 0x131   :  { %702 = vmatprep.mubr.bf16.mxu0 %v409_v17 }
 0x132   :  { %743 = vmatprep.mubr.bf16.mxu1 %v411_v18  ;;  %703 = vmatmul.mubr.bf16.vlgmr.msra.gmra.mrb[4].mxu0 %v408_v10 }
 0x133   :  { %744 = vmatmul.mubr.bf16.vlgmr.msra.gmra.mrb[4].mxu1 %v410_v13 }
 0x205   :  { %v862_v15 = vpop.f32.mrb[4].mxu0 }
 0x206   :  { %v884_v21 = vpop.f32.mrb[4].mxu1  ;;  %v863_v22 = vpop.f32.mrb[5].mxu0 }
 0x207   :  { %v864_v16 = vadd.f32 %v863_v22, %v862_v15  ;;  %v885_v23 = vpop.f32.mrb[5].mxu1  ;;  %v865_v24 = vpop.f32.mrb[6].mxu0 }
 0x208   :  { %v886_v25 = vadd.f32 %v885_v23, %v884_v21  ;;  %v887_v19 = vpop.f32.mrb[6].mxu1  ;;  %v866_v26 = vpop.f32.mrb[7].mxu0 }
 0x209   :  { %v867_v27 = vadd.f32 %v866_v26, %v865_v24  ;;  %v888_v28 = vpop.f32.mrb[7].mxu1 }
 0x20a   :  { %v746_v29 = vadd.f32 %v886_v25, %v864_v16  ;;  %v889_v30 = vadd.f32 %v888_v28, %v887_v19 }
 0x20c   :  { %v752_v32 = vadd.f32 %v746_v29, %v412_v20  ;;  %v749_v33 = vadd.f32 %v889_v30, %v867_v27 }
 0x20e   :  { %754 = vst [vmem:[#allocation5] sm:$0xff] %v752_v32  ;;  %v753_v34 = vadd.f32 %v749_v33, %v413_v31 }
 0x210   :  { %755 = vst [vmem:[#allocation5 + $0x8] sm:$0xff] %v753_v34 }
 0x211   :  { %1043 = shalt.err (!%p1040_p12)
}
 0x212   :  { %s1044_s28 = scalar_lea.hbm %s1248_s5, 256 }
 0x213   :  { %p1045_p13 = scmp.ne.s32.totalorder %s1248_s5, %s1044_s28  ;;  %p1048_p0 = scmp.lt.u32.totalorder %s1044_s28, %s1248_s5 }
 0x215   :  { %p1050_p1 = pnand %p1048_p0, %p1045_p13 }
 0x217   :  { %1053 = shalt.err (!%p1050_p1)
}
 0x218   :  { %s1063_s7 = smov 128   ;;  %s1064_s8 = smov 8  }
 0x219   :  { %767 = dma.vmem_to_hbm [thread:$0]  %s762_s22, 256, %s1248_s5, [#allocation4], %s1063_s7, %s1063_s7, %s1064_s8  }
 0x21a   :  { %1056 = dma.done.wait [#allocation4], 256  }
 0x21b   :  { %1057 = vsyncadd [#allocation4], 4294967040 }
 0x21c   :  { %771 = vsyncpa [#allocation3], 1 }
 0x21d   :  { %772 = vsyncpa [#allocation4], 1 }

</bundles_post_ra>
